<compile_context>
chip_gen: v6e
topology: v6e:2x2x1
jax: 0.10.0
libtpu: 0.0.40
codegen_flags: <defaults>
</compile_context>

<pallas_src>
import inspect

import jax
import jax.numpy as jnp
from jax.experimental import pallas as pl
from jax.experimental.pallas import tpu as pltpu

NUM_LAYERS = 10
LANE = 128
LEAKY_SLOPE = 0.2

_HAS_SINGLE_BUFFER = (
    hasattr(pl, "Buffered")
    and "pipeline_mode" in inspect.signature(pl.BlockSpec).parameters
)


def _round_up(x, m):
    return ((x + m - 1) // m) * m


def _leaky_relu(x, slope=LEAKY_SLOPE):
    # Mathematically identical to where(x > 0, x, slope*x) for slope in (0,1),
    # but a single vmax on the VPU instead of compare+select.
    return jnp.maximum(x, slope * x)


def _vmem_capacity_bytes():
    try:
        info = pltpu.get_tpu_info()
        cap = getattr(info, "vmem_capacity_bytes", None)
        if cap:
            return int(cap)
    except Exception:
        pass
    return 64 * 2**20  # conservative default (v7x per-TC VMEM)


def _pick_tile_b(batch, pdims, act_itemsize, resident_bytes, vmem_budget):
    """Largest batch tile whose live activations fit next to the resident weights."""
    maxd = max(pdims)
    # rough live bytes per batch row in-kernel: double-buffered x/out tiles +
    # f32 accumulator + a couple of compute-dtype activation slabs.
    per_row = (2 * pdims[0] * act_itemsize + 2 * pdims[-1] * act_itemsize
               + 3 * maxd * 4 + 2 * maxd * act_itemsize)
    avail = max(vmem_budget - resident_bytes - (4 << 20), 1 << 20)
    cap_rows = max(avail // per_row, 8)
    row_mult = 8 if act_itemsize >= 4 else 16  # sublane granularity per dtype
    tile = row_mult
    for cand in (512, 384, 256, 128, 64, 32, 16, 8):
        if cand <= cap_rows and cand % row_mult == 0:
            tile = cand
            break
    # do not over-pad small batches
    tile = max(min(tile, _round_up(batch, row_mult)), row_mult)
    # prefer >= 2 batch tiles so a v7x megacore can split the grid across TCs
    if _round_up(batch, tile) // tile == 1 and tile >= 256:
        tile //= 2
    return tile


def _fnn_kernel(*refs):
    # refs = (x_ref, w1..w10, b1..b10, o_ref)
    x_ref = refs[0]
    w_refs = refs[1:1 + NUM_LAYERS]
    b_refs = refs[1 + NUM_LAYERS:1 + 2 * NUM_LAYERS]
    o_ref = refs[1 + 2 * NUM_LAYERS]

    cdtype = x_ref.dtype
    h = x_ref[...]                                   # (tile_b, D0_pad) compute dtype
    for i in range(NUM_LAYERS - 1):
        acc = jnp.dot(h, w_refs[i][...], preferred_element_type=jnp.float32)  # MXU
        z = acc.astype(cdtype) + b_refs[i][...]      # epilogue in compute dtype
        h = _leaky_relu(z)                           # single vmax
    acc = jnp.dot(h, w_refs[-1][...], preferred_element_type=jnp.float32)
    o_ref[...] = (acc.astype(cdtype) + b_refs[-1][...]).astype(o_ref.dtype)


def make_fnn(weights, biases, *, compute_dtype=jnp.bfloat16, single_buffer_weights=True):
    """Pads/casts params once; returns a jitted apply(x) -> [B, out_dim] f32.

    weights[i]: [in_i, out_i] (already transposed vs torch.nn.Linear so the
    kernel computes h @ W + b directly on the MXU); biases[i]: [1, out_i].
    """
    input_dim = weights[0].shape[0]
    out_dim = weights[-1].shape[1]
    dims = [w.shape[0] for w in weights] + [out_dim]
    pdims = [_round_up(d, LANE) for d in dims]
    cdt = jnp.dtype(compute_dtype)

    # --- pad params once (hoisted out of the per-call path) ------------------
    w_p, b_p = [], []
    for i, (w, b) in enumerate(zip(weights, biases)):
        wp = jnp.zeros((pdims[i], pdims[i + 1]), cdt)
        wp = wp.at[: w.shape[0], : w.shape[1]].set(w.astype(cdt))
        bp = jnp.zeros((1, pdims[i + 1]), cdt)
        bp = bp.at[:, : b.shape[-1]].set(b.reshape(1, -1).astype(cdt))
        w_p.append(wp)
        b_p.append(bp)
    w_p, b_p = tuple(w_p), tuple(b_p)

    act_itemsize = cdt.itemsize
    resident_bytes = (sum(int(w.size) for w in w_p) + sum(int(b.size) for b in b_p)) * act_itemsize

    use_single_buffer = single_buffer_weights and _HAS_SINGLE_BUFFER
    buf_factor = 1 if use_single_buffer else 2

    vmem_capacity = _vmem_capacity_bytes()
    chip_cap = int(vmem_capacity * 7 // 8)  # ~56 MiB on v7x, ~112 MiB on v5e/v6e

    # TODO(synk): if buf_factor * resident_bytes exceeds chip_cap (very large hidden
    # sizes), stream each layer's weights as column blocks (memory_space=pl.ANY +
    # pltpu.emit_pipeline) instead of keeping them VMEM-resident.

    def _resident_spec(shape):
        if use_single_buffer:
            return pl.BlockSpec(shape, lambda i: (0, 0), pipeline_mode=pl.Buffered(1))
        return pl.BlockSpec(shape, lambda i: (0, 0))

    def apply(x):
        batch = x.shape[0]
        tile_b = _pick_tile_b(batch, pdims, act_itemsize,
                              buf_factor * resident_bytes, chip_cap)
        b_pad = _round_up(batch, tile_b)
        grid = (b_pad // tile_b,)

        x_p = jnp.zeros((b_pad, pdims[0]), cdt)
        x_p = x_p.at[:batch, :input_dim].set(x.astype(cdt))

        in_specs = (
            [pl.BlockSpec((tile_b, pdims[0]), lambda i: (i, 0))]        # pipelined activations
            + [_resident_spec(tuple(w.shape)) for w in w_p]             # resident weights
            + [_resident_spec(tuple(b.shape)) for b in b_p]             # resident biases
        )
        out_specs = pl.BlockSpec((tile_b, pdims[-1]), lambda i: (i, 0))

        flops = 2 * b_pad * sum(pdims[i] * pdims[i + 1] for i in range(NUM_LAYERS))
        bytes_accessed = (b_pad * pdims[0] * act_itemsize
                          + resident_bytes
                          + b_pad * pdims[-1] * act_itemsize)
        cost = pl.CostEstimate(flops=flops, transcendentals=0,
                               bytes_accessed=bytes_accessed)

        tile_bytes = 2 * tile_b * (pdims[0] + pdims[-1]) * act_itemsize
        act_bytes = tile_b * max(pdims) * (3 * 4 + 2 * act_itemsize)
        needed = buf_factor * resident_bytes + tile_bytes + act_bytes
        vmem_limit = int(min(max(needed + (8 << 20), 32 << 20), chip_cap))

        out_padded = pl.pallas_call(
            _fnn_kernel,
            out_shape=jax.ShapeDtypeStruct((b_pad, pdims[-1]), cdt),
            grid_spec=pltpu.PrefetchScalarGridSpec(
                num_scalar_prefetch=0,
                grid=grid,
                in_specs=in_specs,
                out_specs=out_specs,
            ),
            compiler_params=pltpu.CompilerParams(
                dimension_semantics=("parallel",),
                vmem_limit_bytes=vmem_limit,
            ),
            cost_estimate=cost,
        )(x_p, *w_p, *b_p)

        return out_padded[:batch, :out_dim].astype(jnp.float32)

    return jax.jit(apply)


# ------------------------------- references ---------------------------------
def make_params(key, input_dim, hidden, out_dim):
    """Kaiming-normal weights (fan_in, gain sqrt(2)), PyTorch-default uniform biases."""
    dims = [input_dim] + [hidden] * (NUM_LAYERS - 1) + [out_dim]
    weights, biases = [], []
    for i in range(NUM_LAYERS):
        key, wk, bk = jax.random.split(key, 3)
        fan_in, fan_out = dims[i], dims[i + 1]
        std = jnp.sqrt(2.0 / fan_in)
        w = jax.random.normal(wk, (fan_in, fan_out), jnp.float32) * std
        bound = 1.0 / jnp.sqrt(fan_in)
        b = jax.random.uniform(bk, (1, fan_out), jnp.float32, -bound, bound)
        weights.append(w)
        biases.append(b)
    return weights, biases


def fnn_reference_f32(x, weights, biases):
    h = x
    for i in range(NUM_LAYERS - 1):
        h = _leaky_relu(h @ weights[i] + biases[i])
    return h @ weights[-1] + biases[-1]


def fnn_reference_matched(x, weights, biases, compute_dtype):
    """Pure-JAX reference applying the same cast/epilogue discipline as the kernel."""
    cdt = jnp.dtype(compute_dtype)
    h = x.astype(cdt)
    for i in range(NUM_LAYERS - 1):
        acc = jnp.dot(h, weights[i].astype(cdt), preferred_element_type=jnp.float32)
        h = _leaky_relu(acc.astype(cdt) + biases[i].astype(cdt))
    acc = jnp.dot(h, weights[-1].astype(cdt), preferred_element_type=jnp.float32)
    return (acc.astype(cdt) + biases[-1].astype(cdt)).astype(jnp.float32)


def _build_and_run(x, weights, biases, compute_dtype):
    try:
        fwd = make_fnn(weights, biases, compute_dtype=compute_dtype)
        return jax.block_until_ready(fwd(x))
    except Exception:
        # Fallback if this jax build rejects pl.Buffered(1) as a pipeline_mode:
        # keep default double-buffered resident weights.
        fwd = make_fnn(weights, biases, compute_dtype=compute_dtype,
                       single_buffer_weights=False)
        return jax.block_until_ready(fwd(x))


if __name__ == "__main__":
    key = jax.random.PRNGKey(0)
    B, input_dim, hidden, out_dim = 8, 16, 32, 8

    key, xk = jax.random.split(key)
    x = jax.random.normal(xk, (B, input_dim), jnp.float32)
    weights, biases = make_params(key, input_dim, hidden, out_dim)

    ref_f32 = fnn_reference_f32(x, weights, biases)

    # f32 compute path: tight check against the pure-f32 reference.
    out_f32 = _build_and_run(x, weights, biases, jnp.float32)
    assert out_f32.shape == (B, out_dim), out_f32.shape
    assert jnp.allclose(out_f32, ref_f32, atol=1e-4, rtol=1e-4), "f32 mismatch vs reference"

    # bf16 weights/activations + f32 MXU accumulation (v6e/v7x fast path):
    # check against a reference with matched casts, plus a loose sanity check
    # against the pure-f32 reference (10 chained bf16 layers drift).
    out_bf16 = _build_and_run(x, weights, biases, jnp.bfloat16)
    ref_bf16 = fnn_reference_matched(x, weights, biases, jnp.bfloat16)
    assert out_bf16.shape == (B, out_dim), out_bf16.shape
    assert jnp.allclose(out_bf16, ref_bf16, atol=5e-2, rtol=5e-2), "bf16 mismatch vs matched reference"
    assert jnp.allclose(out_bf16, ref_f32, atol=2e-1, rtol=2e-1), "bf16 drifted too far from f32 reference"

    print("KERNEL_OK")
</pallas_src>

<mosaic_0001>
module attributes {stable_mosaic.version = 11 : i64} {
  func.func @_fnn_kernel(%arg0: i32, %arg1: memref<8x128xf32, #tpu.memory_space<vmem>>, %arg2: memref<128x128xf32, #tpu.memory_space<vmem>>, %arg3: memref<128x128xf32, #tpu.memory_space<vmem>>, %arg4: memref<128x128xf32, #tpu.memory_space<vmem>>, %arg5: memref<128x128xf32, #tpu.memory_space<vmem>>, %arg6: memref<128x128xf32, #tpu.memory_space<vmem>>, %arg7: memref<128x128xf32, #tpu.memory_space<vmem>>, %arg8: memref<128x128xf32, #tpu.memory_space<vmem>>, %arg9: memref<128x128xf32, #tpu.memory_space<vmem>>, %arg10: memref<128x128xf32, #tpu.memory_space<vmem>>, %arg11: memref<128x128xf32, #tpu.memory_space<vmem>>, %arg12: memref<1x128xf32, #tpu.memory_space<vmem>>, %arg13: memref<1x128xf32, #tpu.memory_space<vmem>>, %arg14: memref<1x128xf32, #tpu.memory_space<vmem>>, %arg15: memref<1x128xf32, #tpu.memory_space<vmem>>, %arg16: memref<1x128xf32, #tpu.memory_space<vmem>>, %arg17: memref<1x128xf32, #tpu.memory_space<vmem>>, %arg18: memref<1x128xf32, #tpu.memory_space<vmem>>, %arg19: memref<1x128xf32, #tpu.memory_space<vmem>>, %arg20: memref<1x128xf32, #tpu.memory_space<vmem>>, %arg21: memref<1x128xf32, #tpu.memory_space<vmem>>, %arg22: memref<8x128xf32, #tpu.memory_space<vmem>>) attributes {dimension_semantics = [#tpu.dimension_semantics<parallel>], iteration_bounds = array<i64: 1>, scalar_prefetch = 0 : i64, scratch_operands = 0 : i64, tpu.core_type = #tpu.core_type<tc>, window_params = [{transform_indices = @transform_0, window_bounds = array<i64: 8, 128>}, {pipeline_mode = #tpu.pipeline_mode<synchronous>, transform_indices = @transform_1, window_bounds = array<i64: 128, 128>}, {pipeline_mode = #tpu.pipeline_mode<synchronous>, transform_indices = @transform_2, window_bounds = array<i64: 128, 128>}, {pipeline_mode = #tpu.pipeline_mode<synchronous>, transform_indices = @transform_3, window_bounds = array<i64: 128, 128>}, {pipeline_mode = #tpu.pipeline_mode<synchronous>, transform_indices = @transform_4, window_bounds = array<i64: 128, 128>}, {pipeline_mode = #tpu.pipeline_mode<synchronous>, transform_indices = @transform_5, window_bounds = array<i64: 128, 128>}, {pipeline_mode = #tpu.pipeline_mode<synchronous>, transform_indices = @transform_6, window_bounds = array<i64: 128, 128>}, {pipeline_mode = #tpu.pipeline_mode<synchronous>, transform_indices = @transform_7, window_bounds = array<i64: 128, 128>}, {pipeline_mode = #tpu.pipeline_mode<synchronous>, transform_indices = @transform_8, window_bounds = array<i64: 128, 128>}, {pipeline_mode = #tpu.pipeline_mode<synchronous>, transform_indices = @transform_9, window_bounds = array<i64: 128, 128>}, {pipeline_mode = #tpu.pipeline_mode<synchronous>, transform_indices = @transform_10, window_bounds = array<i64: 128, 128>}, {pipeline_mode = #tpu.pipeline_mode<synchronous>, transform_indices = @transform_11, window_bounds = array<i64: 1, 128>}, {pipeline_mode = #tpu.pipeline_mode<synchronous>, transform_indices = @transform_12, window_bounds = array<i64: 1, 128>}, {pipeline_mode = #tpu.pipeline_mode<synchronous>, transform_indices = @transform_13, window_bounds = array<i64: 1, 128>}, {pipeline_mode = #tpu.pipeline_mode<synchronous>, transform_indices = @transform_14, window_bounds = array<i64: 1, 128>}, {pipeline_mode = #tpu.pipeline_mode<synchronous>, transform_indices = @transform_15, window_bounds = array<i64: 1, 128>}, {pipeline_mode = #tpu.pipeline_mode<synchronous>, transform_indices = @transform_16, window_bounds = array<i64: 1, 128>}, {pipeline_mode = #tpu.pipeline_mode<synchronous>, transform_indices = @transform_17, window_bounds = array<i64: 1, 128>}, {pipeline_mode = #tpu.pipeline_mode<synchronous>, transform_indices = @transform_18, window_bounds = array<i64: 1, 128>}, {pipeline_mode = #tpu.pipeline_mode<synchronous>, transform_indices = @transform_19, window_bounds = array<i64: 1, 128>}, {pipeline_mode = #tpu.pipeline_mode<synchronous>, transform_indices = @transform_20, window_bounds = array<i64: 1, 128>}, {transform_indices = @transform_21, window_bounds = array<i64: 8, 128>}]} {
    %c0 = arith.constant 0 : index
    %c0_0 = arith.constant 0 : index
    %0 = vector.load %arg1[%c0, %c0_0] : memref<8x128xf32, #tpu.memory_space<vmem>>, vector<8x128xf32>
    %c0_1 = arith.constant 0 : index
    %c0_2 = arith.constant 0 : index
    %1 = vector.load %arg2[%c0_1, %c0_2] : memref<128x128xf32, #tpu.memory_space<vmem>>, vector<128x128xf32>
    %cst = arith.constant dense<0.000000e+00> : vector<8x128xf32>
    %2 = tpu.matmul %0, %1, %cst {dimension_numbers = #tpu.dot_dimension_numbers<[1], [0], [0], [1], [0, 0, 1, 1], [], []>} : vector<8x128xf32>, vector<128x128xf32>, vector<8x128xf32> -> vector<8x128xf32>
    %c0_3 = arith.constant 0 : index
    %c0_4 = arith.constant 0 : index
    %3 = vector.load %arg12[%c0_3, %c0_4] : memref<1x128xf32, #tpu.memory_space<vmem>>, vector<1x128xf32>
    %4 = vector.broadcast %3 : vector<1x128xf32> to vector<8x128xf32>
    %5 = arith.addf %2, %4 : vector<8x128xf32>
    %cst_5 = arith.constant 2.000000e-01 : f32
    %6 = vector.broadcast %cst_5 : f32 to vector<8x128xf32>
    %7 = arith.mulf %6, %5 : vector<8x128xf32>
    %8 = arith.maximumf %5, %7 : vector<8x128xf32>
    %c0_6 = arith.constant 0 : index
    %c0_7 = arith.constant 0 : index
    %9 = vector.load %arg3[%c0_6, %c0_7] : memref<128x128xf32, #tpu.memory_space<vmem>>, vector<128x128xf32>
    %cst_8 = arith.constant dense<0.000000e+00> : vector<8x128xf32>
    %10 = tpu.matmul %8, %9, %cst_8 {dimension_numbers = #tpu.dot_dimension_numbers<[1], [0], [0], [1], [0, 0, 1, 1], [], []>} : vector<8x128xf32>, vector<128x128xf32>, vector<8x128xf32> -> vector<8x128xf32>
    %c0_9 = arith.constant 0 : index
    %c0_10 = arith.constant 0 : index
    %11 = vector.load %arg13[%c0_9, %c0_10] : memref<1x128xf32, #tpu.memory_space<vmem>>, vector<1x128xf32>
    %12 = vector.broadcast %11 : vector<1x128xf32> to vector<8x128xf32>
    %13 = arith.addf %10, %12 : vector<8x128xf32>
    %cst_11 = arith.constant 2.000000e-01 : f32
    %14 = vector.broadcast %cst_11 : f32 to vector<8x128xf32>
    %15 = arith.mulf %14, %13 : vector<8x128xf32>
    %16 = arith.maximumf %13, %15 : vector<8x128xf32>
    %c0_12 = arith.constant 0 : index
    %c0_13 = arith.constant 0 : index
    %17 = vector.load %arg4[%c0_12, %c0_13] : memref<128x128xf32, #tpu.memory_space<vmem>>, vector<128x128xf32>
    %cst_14 = arith.constant dense<0.000000e+00> : vector<8x128xf32>
    %18 = tpu.matmul %16, %17, %cst_14 {dimension_numbers = #tpu.dot_dimension_numbers<[1], [0], [0], [1], [0, 0, 1, 1], [], []>} : vector<8x128xf32>, vector<128x128xf32>, vector<8x128xf32> -> vector<8x128xf32>
    %c0_15 = arith.constant 0 : index
    %c0_16 = arith.constant 0 : index
    %19 = vector.load %arg14[%c0_15, %c0_16] : memref<1x128xf32, #tpu.memory_space<vmem>>, vector<1x128xf32>
    %20 = vector.broadcast %19 : vector<1x128xf32> to vector<8x128xf32>
    %21 = arith.addf %18, %20 : vector<8x128xf32>
    %cst_17 = arith.constant 2.000000e-01 : f32
    %22 = vector.broadcast %cst_17 : f32 to vector<8x128xf32>
    %23 = arith.mulf %22, %21 : vector<8x128xf32>
    %24 = arith.maximumf %21, %23 : vector<8x128xf32>
    %c0_18 = arith.constant 0 : index
    %c0_19 = arith.constant 0 : index
    %25 = vector.load %arg5[%c0_18, %c0_19] : memref<128x128xf32, #tpu.memory_space<vmem>>, vector<128x128xf32>
    %cst_20 = arith.constant dense<0.000000e+00> : vector<8x128xf32>
    %26 = tpu.matmul %24, %25, %cst_20 {dimension_numbers = #tpu.dot_dimension_numbers<[1], [0], [0], [1], [0, 0, 1, 1], [], []>} : vector<8x128xf32>, vector<128x128xf32>, vector<8x128xf32> -> vector<8x128xf32>
    %c0_21 = arith.constant 0 : index
    %c0_22 = arith.constant 0 : index
    %27 = vector.load %arg15[%c0_21, %c0_22] : memref<1x128xf32, #tpu.memory_space<vmem>>, vector<1x128xf32>
    %28 = vector.broadcast %27 : vector<1x128xf32> to vector<8x128xf32>
    %29 = arith.addf %26, %28 : vector<8x128xf32>
    %cst_23 = arith.constant 2.000000e-01 : f32
    %30 = vector.broadcast %cst_23 : f32 to vector<8x128xf32>
    %31 = arith.mulf %30, %29 : vector<8x128xf32>
    %32 = arith.maximumf %29, %31 : vector<8x128xf32>
    %c0_24 = arith.constant 0 : index
    %c0_25 = arith.constant 0 : index
    %33 = vector.load %arg6[%c0_24, %c0_25] : memref<128x128xf32, #tpu.memory_space<vmem>>, vector<128x128xf32>
    %cst_26 = arith.constant dense<0.000000e+00> : vector<8x128xf32>
    %34 = tpu.matmul %32, %33, %cst_26 {dimension_numbers = #tpu.dot_dimension_numbers<[1], [0], [0], [1], [0, 0, 1, 1], [], []>} : vector<8x128xf32>, vector<128x128xf32>, vector<8x128xf32> -> vector<8x128xf32>
    %c0_27 = arith.constant 0 : index
    %c0_28 = arith.constant 0 : index
    %35 = vector.load %arg16[%c0_27, %c0_28] : memref<1x128xf32, #tpu.memory_space<vmem>>, vector<1x128xf32>
    %36 = vector.broadcast %35 : vector<1x128xf32> to vector<8x128xf32>
    %37 = arith.addf %34, %36 : vector<8x128xf32>
    %cst_29 = arith.constant 2.000000e-01 : f32
    %38 = vector.broadcast %cst_29 : f32 to vector<8x128xf32>
    %39 = arith.mulf %38, %37 : vector<8x128xf32>
    %40 = arith.maximumf %37, %39 : vector<8x128xf32>
    %c0_30 = arith.constant 0 : index
    %c0_31 = arith.constant 0 : index
    %41 = vector.load %arg7[%c0_30, %c0_31] : memref<128x128xf32, #tpu.memory_space<vmem>>, vector<128x128xf32>
    %cst_32 = arith.constant dense<0.000000e+00> : vector<8x128xf32>
    %42 = tpu.matmul %40, %41, %cst_32 {dimension_numbers = #tpu.dot_dimension_numbers<[1], [0], [0], [1], [0, 0, 1, 1], [], []>} : vector<8x128xf32>, vector<128x128xf32>, vector<8x128xf32> -> vector<8x128xf32>
    %c0_33 = arith.constant 0 : index
    %c0_34 = arith.constant 0 : index
    %43 = vector.load %arg17[%c0_33, %c0_34] : memref<1x128xf32, #tpu.memory_space<vmem>>, vector<1x128xf32>
    %44 = vector.broadcast %43 : vector<1x128xf32> to vector<8x128xf32>
    %45 = arith.addf %42, %44 : vector<8x128xf32>
    %cst_35 = arith.constant 2.000000e-01 : f32
    %46 = vector.broadcast %cst_35 : f32 to vector<8x128xf32>
    %47 = arith.mulf %46, %45 : vector<8x128xf32>
    %48 = arith.maximumf %45, %47 : vector<8x128xf32>
    %c0_36 = arith.constant 0 : index
    %c0_37 = arith.constant 0 : index
    %49 = vector.load %arg8[%c0_36, %c0_37] : memref<128x128xf32, #tpu.memory_space<vmem>>, vector<128x128xf32>
    %cst_38 = arith.constant dense<0.000000e+00> : vector<8x128xf32>
    %50 = tpu.matmul %48, %49, %cst_38 {dimension_numbers = #tpu.dot_dimension_numbers<[1], [0], [0], [1], [0, 0, 1, 1], [], []>} : vector<8x128xf32>, vector<128x128xf32>, vector<8x128xf32> -> vector<8x128xf32>
    %c0_39 = arith.constant 0 : index
    %c0_40 = arith.constant 0 : index
    %51 = vector.load %arg18[%c0_39, %c0_40] : memref<1x128xf32, #tpu.memory_space<vmem>>, vector<1x128xf32>
    %52 = vector.broadcast %51 : vector<1x128xf32> to vector<8x128xf32>
    %53 = arith.addf %50, %52 : vector<8x128xf32>
    %cst_41 = arith.constant 2.000000e-01 : f32
    %54 = vector.broadcast %cst_41 : f32 to vector<8x128xf32>
    %55 = arith.mulf %54, %53 : vector<8x128xf32>
    %56 = arith.maximumf %53, %55 : vector<8x128xf32>
    %c0_42 = arith.constant 0 : index
    %c0_43 = arith.constant 0 : index
    %57 = vector.load %arg9[%c0_42, %c0_43] : memref<128x128xf32, #tpu.memory_space<vmem>>, vector<128x128xf32>
    %cst_44 = arith.constant dense<0.000000e+00> : vector<8x128xf32>
    %58 = tpu.matmul %56, %57, %cst_44 {dimension_numbers = #tpu.dot_dimension_numbers<[1], [0], [0], [1], [0, 0, 1, 1], [], []>} : vector<8x128xf32>, vector<128x128xf32>, vector<8x128xf32> -> vector<8x128xf32>
    %c0_45 = arith.constant 0 : index
    %c0_46 = arith.constant 0 : index
    %59 = vector.load %arg19[%c0_45, %c0_46] : memref<1x128xf32, #tpu.memory_space<vmem>>, vector<1x128xf32>
    %60 = vector.broadcast %59 : vector<1x128xf32> to vector<8x128xf32>
    %61 = arith.addf %58, %60 : vector<8x128xf32>
    %cst_47 = arith.constant 2.000000e-01 : f32
    %62 = vector.broadcast %cst_47 : f32 to vector<8x128xf32>
    %63 = arith.mulf %62, %61 : vector<8x128xf32>
    %64 = arith.maximumf %61, %63 : vector<8x128xf32>
    %c0_48 = arith.constant 0 : index
    %c0_49 = arith.constant 0 : index
    %65 = vector.load %arg10[%c0_48, %c0_49] : memref<128x128xf32, #tpu.memory_space<vmem>>, vector<128x128xf32>
    %cst_50 = arith.constant dense<0.000000e+00> : vector<8x128xf32>
    %66 = tpu.matmul %64, %65, %cst_50 {dimension_numbers = #tpu.dot_dimension_numbers<[1], [0], [0], [1], [0, 0, 1, 1], [], []>} : vector<8x128xf32>, vector<128x128xf32>, vector<8x128xf32> -> vector<8x128xf32>
    %c0_51 = arith.constant 0 : index
    %c0_52 = arith.constant 0 : index
    %67 = vector.load %arg20[%c0_51, %c0_52] : memref<1x128xf32, #tpu.memory_space<vmem>>, vector<1x128xf32>
    %68 = vector.broadcast %67 : vector<1x128xf32> to vector<8x128xf32>
    %69 = arith.addf %66, %68 : vector<8x128xf32>
    %cst_53 = arith.constant 2.000000e-01 : f32
    %70 = vector.broadcast %cst_53 : f32 to vector<8x128xf32>
    %71 = arith.mulf %70, %69 : vector<8x128xf32>
    %72 = arith.maximumf %69, %71 : vector<8x128xf32>
    %c0_54 = arith.constant 0 : index
    %c0_55 = arith.constant 0 : index
    %73 = vector.load %arg11[%c0_54, %c0_55] : memref<128x128xf32, #tpu.memory_space<vmem>>, vector<128x128xf32>
    %cst_56 = arith.constant dense<0.000000e+00> : vector<8x128xf32>
    %74 = tpu.matmul %72, %73, %cst_56 {dimension_numbers = #tpu.dot_dimension_numbers<[1], [0], [0], [1], [0, 0, 1, 1], [], []>} : vector<8x128xf32>, vector<128x128xf32>, vector<8x128xf32> -> vector<8x128xf32>
    %c0_57 = arith.constant 0 : index
    %c0_58 = arith.constant 0 : index
    %75 = vector.load %arg21[%c0_57, %c0_58] : memref<1x128xf32, #tpu.memory_space<vmem>>, vector<1x128xf32>
    %76 = vector.broadcast %75 : vector<1x128xf32> to vector<8x128xf32>
    %77 = arith.addf %74, %76 : vector<8x128xf32>
    %c0_59 = arith.constant 0 : index
    %c0_60 = arith.constant 0 : index
    %78 = vector.load %arg22[%c0_59, %c0_60] : memref<8x128xf32, #tpu.memory_space<vmem>>, vector<8x128xf32>
    tpu.vector_store %arg22[%c0_59, %c0_60], %77 {strides = array<i32>} : memref<8x128xf32, #tpu.memory_space<vmem>>, vector<8x128xf32>,
    return
  }
  func.func @transform_0(%arg0: i32) -> (i32, i32) {
    %c0_i32 = arith.constant 0 : i32
    %c0_i32_0 = arith.constant 0 : i32
    return %arg0, %c0_i32 : i32, i32
  }
  func.func @transform_1(%arg0: i32) -> (i32, i32) {
    %c0_i32 = arith.constant 0 : i32
    %c0_i32_0 = arith.constant 0 : i32
    %c0_i32_1 = arith.constant 0 : i32
    return %c0_i32, %c0_i32_0 : i32, i32
  }
  func.func @transform_2(%arg0: i32) -> (i32, i32) {
    %c0_i32 = arith.constant 0 : i32
    %c0_i32_0 = arith.constant 0 : i32
    %c0_i32_1 = arith.constant 0 : i32
    return %c0_i32, %c0_i32_0 : i32, i32
  }
  func.func @transform_3(%arg0: i32) -> (i32, i32) {
    %c0_i32 = arith.constant 0 : i32
    %c0_i32_0 = arith.constant 0 : i32
    %c0_i32_1 = arith.constant 0 : i32
    return %c0_i32, %c0_i32_0 : i32, i32
  }
  func.func @transform_4(%arg0: i32) -> (i32, i32) {
    %c0_i32 = arith.constant 0 : i32
    %c0_i32_0 = arith.constant 0 : i32
    %c0_i32_1 = arith.constant 0 : i32
    return %c0_i32, %c0_i32_0 : i32, i32
  }
  func.func @transform_5(%arg0: i32) -> (i32, i32) {
    %c0_i32 = arith.constant 0 : i32
    %c0_i32_0 = arith.constant 0 : i32
    %c0_i32_1 = arith.constant 0 : i32
    return %c0_i32, %c0_i32_0 : i32, i32
  }
  func.func @transform_6(%arg0: i32) -> (i32, i32) {
    %c0_i32 = arith.constant 0 : i32
    %c0_i32_0 = arith.constant 0 : i32
    %c0_i32_1 = arith.constant 0 : i32
    return %c0_i32, %c0_i32_0 : i32, i32
  }
  func.func @transform_7(%arg0: i32) -> (i32, i32) {
    %c0_i32 = arith.constant 0 : i32
    %c0_i32_0 = arith.constant 0 : i32
    %c0_i32_1 = arith.constant 0 : i32
    return %c0_i32, %c0_i32_0 : i32, i32
  }
  func.func @transform_8(%arg0: i32) -> (i32, i32) {
    %c0_i32 = arith.constant 0 : i32
    %c0_i32_0 = arith.constant 0 : i32
    %c0_i32_1 = arith.constant 0 : i32
    return %c0_i32, %c0_i32_0 : i32, i32
  }
  func.func @transform_9(%arg0: i32) -> (i32, i32) {
    %c0_i32 = arith.constant 0 : i32
    %c0_i32_0 = arith.constant 0 : i32
    %c0_i32_1 = arith.constant 0 : i32
    return %c0_i32, %c0_i32_0 : i32, i32
  }
  func.func @transform_10(%arg0: i32) -> (i32, i32) {
    %c0_i32 = arith.constant 0 : i32
    %c0_i32_0 = arith.constant 0 : i32
    %c0_i32_1 = arith.constant 0 : i32
    return %c0_i32, %c0_i32_0 : i32, i32
  }
  func.func @transform_11(%arg0: i32) -> (i32, i32) {
    %c0_i32 = arith.constant 0 : i32
    %c0_i32_0 = arith.constant 0 : i32
    %c0_i32_1 = arith.constant 0 : i32
    return %c0_i32, %c0_i32_0 : i32, i32
  }
  func.func @transform_12(%arg0: i32) -> (i32, i32) {
    %c0_i32 = arith.constant 0 : i32
    %c0_i32_0 = arith.constant 0 : i32
    %c0_i32_1 = arith.constant 0 : i32
    return %c0_i32, %c0_i32_0 : i32, i32
  }
  func.func @transform_13(%arg0: i32) -> (i32, i32) {
    %c0_i32 = arith.constant 0 : i32
    %c0_i32_0 = arith.constant 0 : i32
    %c0_i32_1 = arith.constant 0 : i32
    return %c0_i32, %c0_i32_0 : i32, i32
  }
  func.func @transform_14(%arg0: i32) -> (i32, i32) {
    %c0_i32 = arith.constant 0 : i32
    %c0_i32_0 = arith.constant 0 : i32
    %c0_i32_1 = arith.constant 0 : i32
    return %c0_i32, %c0_i32_0 : i32, i32
  }
  func.func @transform_15(%arg0: i32) -> (i32, i32) {
    %c0_i32 = arith.constant 0 : i32
    %c0_i32_0 = arith.constant 0 : i32
    %c0_i32_1 = arith.constant 0 : i32
    return %c0_i32, %c0_i32_0 : i32, i32
  }
  func.func @transform_16(%arg0: i32) -> (i32, i32) {
    %c0_i32 = arith.constant 0 : i32
    %c0_i32_0 = arith.constant 0 : i32
    %c0_i32_1 = arith.constant 0 : i32
    return %c0_i32, %c0_i32_0 : i32, i32
  }
  func.func @transform_17(%arg0: i32) -> (i32, i32) {
    %c0_i32 = arith.constant 0 : i32
    %c0_i32_0 = arith.constant 0 : i32
    %c0_i32_1 = arith.constant 0 : i32
    return %c0_i32, %c0_i32_0 : i32, i32
  }
  func.func @transform_18(%arg0: i32) -> (i32, i32) {
    %c0_i32 = arith.constant 0 : i32
    %c0_i32_0 = arith.constant 0 : i32
    %c0_i32_1 = arith.constant 0 : i32
    return %c0_i32, %c0_i32_0 : i32, i32
  }
  func.func @transform_19(%arg0: i32) -> (i32, i32) {
    %c0_i32 = arith.constant 0 : i32
    %c0_i32_0 = arith.constant 0 : i32
    %c0_i32_1 = arith.constant 0 : i32
    return %c0_i32, %c0_i32_0 : i32, i32
  }
  func.func @transform_20(%arg0: i32) -> (i32, i32) {
    %c0_i32 = arith.constant 0 : i32
    %c0_i32_0 = arith.constant 0 : i32
    %c0_i32_1 = arith.constant 0 : i32
    return %c0_i32, %c0_i32_0 : i32, i32
  }
  func.func @transform_21(%arg0: i32) -> (i32, i32) {
    %c0_i32 = arith.constant 0 : i32
    %c0_i32_0 = arith.constant 0 : i32
    return %arg0, %c0_i32 : i32, i32
  }
}

module attributes {stable_mosaic.version = 11 : i64} {
  func.func @_fnn_kernel(%arg0: i32, %arg1: memref<8x128xf32, #tpu.memory_space<vmem>>, %arg2: memref<128x128xf32, #tpu.memory_space<vmem>>, %arg3: memref<128x128xf32, #tpu.memory_space<vmem>>, %arg4: memref<128x128xf32, #tpu.memory_space<vmem>>, %arg5: memref<128x128xf32, #tpu.memory_space<vmem>>, %arg6: memref<128x128xf32, #tpu.memory_space<vmem>>, %arg7: memref<128x128xf32, #tpu.memory_space<vmem>>, %arg8: memref<128x128xf32, #tpu.memory_space<vmem>>, %arg9: memref<128x128xf32, #tpu.memory_space<vmem>>, %arg10: memref<128x128xf32, #tpu.memory_space<vmem>>, %arg11: memref<128x128xf32, #tpu.memory_space<vmem>>, %arg12: memref<1x128xf32, #tpu.memory_space<vmem>>, %arg13: memref<1x128xf32, #tpu.memory_space<vmem>>, %arg14: memref<1x128xf32, #tpu.memory_space<vmem>>, %arg15: memref<1x128xf32, #tpu.memory_space<vmem>>, %arg16: memref<1x128xf32, #tpu.memory_space<vmem>>, %arg17: memref<1x128xf32, #tpu.memory_space<vmem>>, %arg18: memref<1x128xf32, #tpu.memory_space<vmem>>, %arg19: memref<1x128xf32, #tpu.memory_space<vmem>>, %arg20: memref<1x128xf32, #tpu.memory_space<vmem>>, %arg21: memref<1x128xf32, #tpu.memory_space<vmem>>, %arg22: memref<8x128xf32, #tpu.memory_space<vmem>>) attributes {dimension_semantics = [#tpu.dimension_semantics<parallel>], iteration_bounds = array<i64: 1>, scalar_prefetch = 0 : i64, scratch_operands = 0 : i64, tpu.core_type = #tpu.core_type<tc>, window_params = [{transform_indices = @transform_0, window_bounds = array<i64: 8, 128>}, {pipeline_mode = #tpu.pipeline_mode<synchronous>, transform_indices = @transform_1, window_bounds = array<i64: 128, 128>}, {pipeline_mode = #tpu.pipeline_mode<synchronous>, transform_indices = @transform_2, window_bounds = array<i64: 128, 128>}, {pipeline_mode = #tpu.pipeline_mode<synchronous>, transform_indices = @transform_3, window_bounds = array<i64: 128, 128>}, {pipeline_mode = #tpu.pipeline_mode<synchronous>, transform_indices = @transform_4, window_bounds = array<i64: 128, 128>}, {pipeline_mode = #tpu.pipeline_mode<synchronous>, transform_indices = @transform_5, window_bounds = array<i64: 128, 128>}, {pipeline_mode = #tpu.pipeline_mode<synchronous>, transform_indices = @transform_6, window_bounds = array<i64: 128, 128>}, {pipeline_mode = #tpu.pipeline_mode<synchronous>, transform_indices = @transform_7, window_bounds = array<i64: 128, 128>}, {pipeline_mode = #tpu.pipeline_mode<synchronous>, transform_indices = @transform_8, window_bounds = array<i64: 128, 128>}, {pipeline_mode = #tpu.pipeline_mode<synchronous>, transform_indices = @transform_9, window_bounds = array<i64: 128, 128>}, {pipeline_mode = #tpu.pipeline_mode<synchronous>, transform_indices = @transform_10, window_bounds = array<i64: 128, 128>}, {pipeline_mode = #tpu.pipeline_mode<synchronous>, transform_indices = @transform_11, window_bounds = array<i64: 1, 128>}, {pipeline_mode = #tpu.pipeline_mode<synchronous>, transform_indices = @transform_12, window_bounds = array<i64: 1, 128>}, {pipeline_mode = #tpu.pipeline_mode<synchronous>, transform_indices = @transform_13, window_bounds = array<i64: 1, 128>}, {pipeline_mode = #tpu.pipeline_mode<synchronous>, transform_indices = @transform_14, window_bounds = array<i64: 1, 128>}, {pipeline_mode = #tpu.pipeline_mode<synchronous>, transform_indices = @transform_15, window_bounds = array<i64: 1, 128>}, {pipeline_mode = #tpu.pipeline_mode<synchronous>, transform_indices = @transform_16, window_bounds = array<i64: 1, 128>}, {pipeline_mode = #tpu.pipeline_mode<synchronous>, transform_indices = @transform_17, window_bounds = array<i64: 1, 128>}, {pipeline_mode = #tpu.pipeline_mode<synchronous>, transform_indices = @transform_18, window_bounds = array<i64: 1, 128>}, {pipeline_mode = #tpu.pipeline_mode<synchronous>, transform_indices = @transform_19, window_bounds = array<i64: 1, 128>}, {pipeline_mode = #tpu.pipeline_mode<synchronous>, transform_indices = @transform_20, window_bounds = array<i64: 1, 128>}, {transform_indices = @transform_21, window_bounds = array<i64: 8, 128>}]} {
    %c0 = arith.constant 0 : index
    %c0_0 = arith.constant 0 : index
    %0 = vector.load %arg1[%c0, %c0_0] : memref<8x128xf32, #tpu.memory_space<vmem>>, vector<8x128xf32>
    %c0_1 = arith.constant 0 : index
    %c0_2 = arith.constant 0 : index
    %1 = vector.load %arg2[%c0_1, %c0_2] : memref<128x128xf32, #tpu.memory_space<vmem>>, vector<128x128xf32>
    %cst = arith.constant dense<0.000000e+00> : vector<8x128xf32>
    %2 = tpu.matmul %0, %1, %cst {dimension_numbers = #tpu.dot_dimension_numbers<[1], [0], [0], [1], [0, 0, 1, 1], [], []>} : vector<8x128xf32>, vector<128x128xf32>, vector<8x128xf32> -> vector<8x128xf32>
    %c0_3 = arith.constant 0 : index
    %c0_4 = arith.constant 0 : index
    %3 = vector.load %arg12[%c0_3, %c0_4] : memref<1x128xf32, #tpu.memory_space<vmem>>, vector<1x128xf32>
    %4 = vector.broadcast %3 : vector<1x128xf32> to vector<8x128xf32>
    %5 = arith.addf %2, %4 : vector<8x128xf32>
    %cst_5 = arith.constant 2.000000e-01 : f32
    %6 = vector.broadcast %cst_5 : f32 to vector<8x128xf32>
    %7 = arith.mulf %6, %5 : vector<8x128xf32>
    %8 = arith.maximumf %5, %7 : vector<8x128xf32>
    %c0_6 = arith.constant 0 : index
    %c0_7 = arith.constant 0 : index
    %9 = vector.load %arg3[%c0_6, %c0_7] : memref<128x128xf32, #tpu.memory_space<vmem>>, vector<128x128xf32>
    %cst_8 = arith.constant dense<0.000000e+00> : vector<8x128xf32>
    %10 = tpu.matmul %8, %9, %cst_8 {dimension_numbers = #tpu.dot_dimension_numbers<[1], [0], [0], [1], [0, 0, 1, 1], [], []>} : vector<8x128xf32>, vector<128x128xf32>, vector<8x128xf32> -> vector<8x128xf32>
    %c0_9 = arith.constant 0 : index
    %c0_10 = arith.constant 0 : index
    %11 = vector.load %arg13[%c0_9, %c0_10] : memref<1x128xf32, #tpu.memory_space<vmem>>, vector<1x128xf32>
    %12 = vector.broadcast %11 : vector<1x128xf32> to vector<8x128xf32>
    %13 = arith.addf %10, %12 : vector<8x128xf32>
    %cst_11 = arith.constant 2.000000e-01 : f32
    %14 = vector.broadcast %cst_11 : f32 to vector<8x128xf32>
    %15 = arith.mulf %14, %13 : vector<8x128xf32>
    %16 = arith.maximumf %13, %15 : vector<8x128xf32>
    %c0_12 = arith.constant 0 : index
    %c0_13 = arith.constant 0 : index
    %17 = vector.load %arg4[%c0_12, %c0_13] : memref<128x128xf32, #tpu.memory_space<vmem>>, vector<128x128xf32>
    %cst_14 = arith.constant dense<0.000000e+00> : vector<8x128xf32>
    %18 = tpu.matmul %16, %17, %cst_14 {dimension_numbers = #tpu.dot_dimension_numbers<[1], [0], [0], [1], [0, 0, 1, 1], [], []>} : vector<8x128xf32>, vector<128x128xf32>, vector<8x128xf32> -> vector<8x128xf32>
    %c0_15 = arith.constant 0 : index
    %c0_16 = arith.constant 0 : index
    %19 = vector.load %arg14[%c0_15, %c0_16] : memref<1x128xf32, #tpu.memory_space<vmem>>, vector<1x128xf32>
    %20 = vector.broadcast %19 : vector<1x128xf32> to vector<8x128xf32>
    %21 = arith.addf %18, %20 : vector<8x128xf32>
    %cst_17 = arith.constant 2.000000e-01 : f32
    %22 = vector.broadcast %cst_17 : f32 to vector<8x128xf32>
    %23 = arith.mulf %22, %21 : vector<8x128xf32>
    %24 = arith.maximumf %21, %23 : vector<8x128xf32>
    %c0_18 = arith.constant 0 : index
    %c0_19 = arith.constant 0 : index
    %25 = vector.load %arg5[%c0_18, %c0_19] : memref<128x128xf32, #tpu.memory_space<vmem>>, vector<128x128xf32>
    %cst_20 = arith.constant dense<0.000000e+00> : vector<8x128xf32>
    %26 = tpu.matmul %24, %25, %cst_20 {dimension_numbers = #tpu.dot_dimension_numbers<[1], [0], [0], [1], [0, 0, 1, 1], [], []>} : vector<8x128xf32>, vector<128x128xf32>, vector<8x128xf32> -> vector<8x128xf32>
    %c0_21 = arith.constant 0 : index
    %c0_22 = arith.constant 0 : index
    %27 = vector.load %arg15[%c0_21, %c0_22] : memref<1x128xf32, #tpu.memory_space<vmem>>, vector<1x128xf32>
    %28 = vector.broadcast %27 : vector<1x128xf32> to vector<8x128xf32>
    %29 = arith.addf %26, %28 : vector<8x128xf32>
    %cst_23 = arith.constant 2.000000e-01 : f32
    %30 = vector.broadcast %cst_23 : f32 to vector<8x128xf32>
    %31 = arith.mulf %30, %29 : vector<8x128xf32>
    %32 = arith.maximumf %29, %31 : vector<8x128xf32>
    %c0_24 = arith.constant 0 : index
    %c0_25 = arith.constant 0 : index
    %33 = vector.load %arg6[%c0_24, %c0_25] : memref<128x128xf32, #tpu.memory_space<vmem>>, vector<128x128xf32>
    %cst_26 = arith.constant dense<0.000000e+00> : vector<8x128xf32>
    %34 = tpu.matmul %32, %33, %cst_26 {dimension_numbers = #tpu.dot_dimension_numbers<[1], [0], [0], [1], [0, 0, 1, 1], [], []>} : vector<8x128xf32>, vector<128x128xf32>, vector<8x128xf32> -> vector<8x128xf32>
    %c0_27 = arith.constant 0 : index
    %c0_28 = arith.constant 0 : index
    %35 = vector.load %arg16[%c0_27, %c0_28] : memref<1x128xf32, #tpu.memory_space<vmem>>, vector<1x128xf32>
    %36 = vector.broadcast %35 : vector<1x128xf32> to vector<8x128xf32>
    %37 = arith.addf %34, %36 : vector<8x128xf32>
    %cst_29 = arith.constant 2.000000e-01 : f32
    %38 = vector.broadcast %cst_29 : f32 to vector<8x128xf32>
    %39 = arith.mulf %38, %37 : vector<8x128xf32>
    %40 = arith.maximumf %37, %39 : vector<8x128xf32>
    %c0_30 = arith.constant 0 : index
    %c0_31 = arith.constant 0 : index
    %41 = vector.load %arg7[%c0_30, %c0_31] : memref<128x128xf32, #tpu.memory_space<vmem>>, vector<128x128xf32>
    %cst_32 = arith.constant dense<0.000000e+00> : vector<8x128xf32>
    %42 = tpu.matmul %40, %41, %cst_32 {dimension_numbers = #tpu.dot_dimension_numbers<[1], [0], [0], [1], [0, 0, 1, 1], [], []>} : vector<8x128xf32>, vector<128x128xf32>, vector<8x128xf32> -> vector<8x128xf32>
    %c0_33 = arith.constant 0 : index
    %c0_34 = arith.constant 0 : index
    %43 = vector.load %arg17[%c0_33, %c0_34] : memref<1x128xf32, #tpu.memory_space<vmem>>, vector<1x128xf32>
    %44 = vector.broadcast %43 : vector<1x128xf32> to vector<8x128xf32>
    %45 = arith.addf %42, %44 : vector<8x128xf32>
    %cst_35 = arith.constant 2.000000e-01 : f32
    %46 = vector.broadcast %cst_35 : f32 to vector<8x128xf32>
    %47 = arith.mulf %46, %45 : vector<8x128xf32>
    %48 = arith.maximumf %45, %47 : vector<8x128xf32>
    %c0_36 = arith.constant 0 : index
    %c0_37 = arith.constant 0 : index
    %49 = vector.load %arg8[%c0_36, %c0_37] : memref<128x128xf32, #tpu.memory_space<vmem>>, vector<128x128xf32>
    %cst_38 = arith.constant dense<0.000000e+00> : vector<8x128xf32>
    %50 = tpu.matmul %48, %49, %cst_38 {dimension_numbers = #tpu.dot_dimension_numbers<[1], [0], [0], [1], [0, 0, 1, 1], [], []>} : vector<8x128xf32>, vector<128x128xf32>, vector<8x128xf32> -> vector<8x128xf32>
    %c0_39 = arith.constant 0 : index
    %c0_40 = arith.constant 0 : index
    %51 = vector.load %arg18[%c0_39, %c0_40] : memref<1x128xf32, #tpu.memory_space<vmem>>, vector<1x128xf32>
    %52 = vector.broadcast %51 : vector<1x128xf32> to vector<8x128xf32>
    %53 = arith.addf %50, %52 : vector<8x128xf32>
    %cst_41 = arith.constant 2.000000e-01 : f32
    %54 = vector.broadcast %cst_41 : f32 to vector<8x128xf32>
    %55 = arith.mulf %54, %53 : vector<8x128xf32>
    %56 = arith.maximumf %53, %55 : vector<8x128xf32>
    %c0_42 = arith.constant 0 : index
    %c0_43 = arith.constant 0 : index
    %57 = vector.load %arg9[%c0_42, %c0_43] : memref<128x128xf32, #tpu.memory_space<vmem>>, vector<128x128xf32>
    %cst_44 = arith.constant dense<0.000000e+00> : vector<8x128xf32>
    %58 = tpu.matmul %56, %57, %cst_44 {dimension_numbers = #tpu.dot_dimension_numbers<[1], [0], [0], [1], [0, 0, 1, 1], [], []>} : vector<8x128xf32>, vector<128x128xf32>, vector<8x128xf32> -> vector<8x128xf32>
    %c0_45 = arith.constant 0 : index
    %c0_46 = arith.constant 0 : index
    %59 = vector.load %arg19[%c0_45, %c0_46] : memref<1x128xf32, #tpu.memory_space<vmem>>, vector<1x128xf32>
    %60 = vector.broadcast %59 : vector<1x128xf32> to vector<8x128xf32>
    %61 = arith.addf %58, %60 : vector<8x128xf32>
    %cst_47 = arith.constant 2.000000e-01 : f32
    %62 = vector.broadcast %cst_47 : f32 to vector<8x128xf32>
    %63 = arith.mulf %62, %61 : vector<8x128xf32>
    %64 = arith.maximumf %61, %63 : vector<8x128xf32>
    %c0_48 = arith.constant 0 : index
    %c0_49 = arith.constant 0 : index
    %65 = vector.load %arg10[%c0_48, %c0_49] : memref<128x128xf32, #tpu.memory_space<vmem>>, vector<128x128xf32>
    %cst_50 = arith.constant dense<0.000000e+00> : vector<8x128xf32>
    %66 = tpu.matmul %64, %65, %cst_50 {dimension_numbers = #tpu.dot_dimension_numbers<[1], [0], [0], [1], [0, 0, 1, 1], [], []>} : vector<8x128xf32>, vector<128x128xf32>, vector<8x128xf32> -> vector<8x128xf32>
    %c0_51 = arith.constant 0 : index
    %c0_52 = arith.constant 0 : index
    %67 = vector.load %arg20[%c0_51, %c0_52] : memref<1x128xf32, #tpu.memory_space<vmem>>, vector<1x128xf32>
    %68 = vector.broadcast %67 : vector<1x128xf32> to vector<8x128xf32>
    %69 = arith.addf %66, %68 : vector<8x128xf32>
    %cst_53 = arith.constant 2.000000e-01 : f32
    %70 = vector.broadcast %cst_53 : f32 to vector<8x128xf32>
    %71 = arith.mulf %70, %69 : vector<8x128xf32>
    %72 = arith.maximumf %69, %71 : vector<8x128xf32>
    %c0_54 = arith.constant 0 : index
    %c0_55 = arith.constant 0 : index
    %73 = vector.load %arg11[%c0_54, %c0_55] : memref<128x128xf32, #tpu.memory_space<vmem>>, vector<128x128xf32>
    %cst_56 = arith.constant dense<0.000000e+00> : vector<8x128xf32>
    %74 = tpu.matmul %72, %73, %cst_56 {dimension_numbers = #tpu.dot_dimension_numbers<[1], [0], [0], [1], [0, 0, 1, 1], [], []>} : vector<8x128xf32>, vector<128x128xf32>, vector<8x128xf32> -> vector<8x128xf32>
    %c0_57 = arith.constant 0 : index
    %c0_58 = arith.constant 0 : index
    %75 = vector.load %arg21[%c0_57, %c0_58] : memref<1x128xf32, #tpu.memory_space<vmem>>, vector<1x128xf32>
    %76 = vector.broadcast %75 : vector<1x128xf32> to vector<8x128xf32>
    %77 = arith.addf %74, %76 : vector<8x128xf32>
    %c0_59 = arith.constant 0 : index
    %c0_60 = arith.constant 0 : index
    %78 = vector.load %arg22[%c0_59, %c0_60] : memref<8x128xf32, #tpu.memory_space<vmem>>, vector<8x128xf32>
    tpu.vector_store %arg22[%c0_59, %c0_60], %77 {strides = array<i32>} : memref<8x128xf32, #tpu.memory_space<vmem>>, vector<8x128xf32>,
    return
  }
  func.func @transform_0(%arg0: i32) -> (i32, i32) {
    %c0_i32 = arith.constant 0 : i32
    %c0_i32_0 = arith.constant 0 : i32
    return %arg0, %c0_i32 : i32, i32
  }
  func.func @transform_1(%arg0: i32) -> (i32, i32) {
    %c0_i32 = arith.constant 0 : i32
    %c0_i32_0 = arith.constant 0 : i32
    %c0_i32_1 = arith.constant 0 : i32
    return %c0_i32, %c0_i32_0 : i32, i32
  }
  func.func @transform_2(%arg0: i32) -> (i32, i32) {
    %c0_i32 = arith.constant 0 : i32
    %c0_i32_0 = arith.constant 0 : i32
    %c0_i32_1 = arith.constant 0 : i32
    return %c0_i32, %c0_i32_0 : i32, i32
  }
  func.func @transform_3(%arg0: i32) -> (i32, i32) {
    %c0_i32 = arith.constant 0 : i32
    %c0_i32_0 = arith.constant 0 : i32
    %c0_i32_1 = arith.constant 0 : i32
    return %c0_i32, %c0_i32_0 : i32, i32
  }
  func.func @transform_4(%arg0: i32) -> (i32, i32) {
    %c0_i32 = arith.constant 0 : i32
    %c0_i32_0 = arith.constant 0 : i32
    %c0_i32_1 = arith.constant 0 : i32
    return %c0_i32, %c0_i32_0 : i32, i32
  }
  func.func @transform_5(%arg0: i32) -> (i32, i32) {
    %c0_i32 = arith.constant 0 : i32
    %c0_i32_0 = arith.constant 0 : i32
    %c0_i32_1 = arith.constant 0 : i32
    return %c0_i32, %c0_i32_0 : i32, i32
  }
  func.func @transform_6(%arg0: i32) -> (i32, i32) {
    %c0_i32 = arith.constant 0 : i32
    %c0_i32_0 = arith.constant 0 : i32
    %c0_i32_1 = arith.constant 0 : i32
    return %c0_i32, %c0_i32_0 : i32, i32
  }
  func.func @transform_7(%arg0: i32) -> (i32, i32) {
    %c0_i32 = arith.constant 0 : i32
    %c0_i32_0 = arith.constant 0 : i32
    %c0_i32_1 = arith.constant 0 : i32
    return %c0_i32, %c0_i32_0 : i32, i32
  }
  func.func @transform_8(%arg0: i32) -> (i32, i32) {
    %c0_i32 = arith.constant 0 : i32
    %c0_i32_0 = arith.constant 0 : i32
    %c0_i32_1 = arith.constant 0 : i32
    return %c0_i32, %c0_i32_0 : i32, i32
  }
  func.func @transform_9(%arg0: i32) -> (i32, i32) {
    %c0_i32 = arith.constant 0 : i32
    %c0_i32_0 = arith.constant 0 : i32
    %c0_i32_1 = arith.constant 0 : i32
    return %c0_i32, %c0_i32_0 : i32, i32
  }
  func.func @transform_10(%arg0: i32) -> (i32, i32) {
    %c0_i32 = arith.constant 0 : i32
    %c0_i32_0 = arith.constant 0 : i32
    %c0_i32_1 = arith.constant 0 : i32
    return %c0_i32, %c0_i32_0 : i32, i32
  }
  func.func @transform_11(%arg0: i32) -> (i32, i32) {
    %c0_i32 = arith.constant 0 : i32
    %c0_i32_0 = arith.constant 0 : i32
    %c0_i32_1 = arith.constant 0 : i32
    return %c0_i32, %c0_i32_0 : i32, i32
  }
  func.func @transform_12(%arg0: i32) -> (i32, i32) {
    %c0_i32 = arith.constant 0 : i32
    %c0_i32_0 = arith.constant 0 : i32
    %c0_i32_1 = arith.constant 0 : i32
    return %c0_i32, %c0_i32_0 : i32, i32
  }
  func.func @transform_13(%arg0: i32) -> (i32, i32) {
    %c0_i32 = arith.constant 0 : i32
    %c0_i32_0 = arith.constant 0 : i32
    %c0_i32_1 = arith.constant 0 : i32
    return %c0_i32, %c0_i32_0 : i32, i32
  }
  func.func @transform_14(%arg0: i32) -> (i32, i32) {
    %c0_i32 = arith.constant 0 : i32
    %c0_i32_0 = arith.constant 0 : i32
    %c0_i32_1 = arith.constant 0 : i32
    return %c0_i32, %c0_i32_0 : i32, i32
  }
  func.func @transform_15(%arg0: i32) -> (i32, i32) {
    %c0_i32 = arith.constant 0 : i32
    %c0_i32_0 = arith.constant 0 : i32
    %c0_i32_1 = arith.constant 0 : i32
    return %c0_i32, %c0_i32_0 : i32, i32
  }
  func.func @transform_16(%arg0: i32) -> (i32, i32) {
    %c0_i32 = arith.constant 0 : i32
    %c0_i32_0 = arith.constant 0 : i32
    %c0_i32_1 = arith.constant 0 : i32
    return %c0_i32, %c0_i32_0 : i32, i32
  }
  func.func @transform_17(%arg0: i32) -> (i32, i32) {
    %c0_i32 = arith.constant 0 : i32
    %c0_i32_0 = arith.constant 0 : i32
    %c0_i32_1 = arith.constant 0 : i32
    return %c0_i32, %c0_i32_0 : i32, i32
  }
  func.func @transform_18(%arg0: i32) -> (i32, i32) {
    %c0_i32 = arith.constant 0 : i32
    %c0_i32_0 = arith.constant 0 : i32
    %c0_i32_1 = arith.constant 0 : i32
    return %c0_i32, %c0_i32_0 : i32, i32
  }
  func.func @transform_19(%arg0: i32) -> (i32, i32) {
    %c0_i32 = arith.constant 0 : i32
    %c0_i32_0 = arith.constant 0 : i32
    %c0_i32_1 = arith.constant 0 : i32
    return %c0_i32, %c0_i32_0 : i32, i32
  }
  func.func @transform_20(%arg0: i32) -> (i32, i32) {
    %c0_i32 = arith.constant 0 : i32
    %c0_i32_0 = arith.constant 0 : i32
    %c0_i32_1 = arith.constant 0 : i32
    return %c0_i32, %c0_i32_0 : i32, i32
  }
  func.func @transform_21(%arg0: i32) -> (i32, i32) {
    %c0_i32 = arith.constant 0 : i32
    %c0_i32_0 = arith.constant 0 : i32
    return %arg0, %c0_i32 : i32, i32
  }
}

</mosaic_0001>

<bundles_post_ra>
// kernel: apply.1
= control target key start
LH: loop header
LB: loop body
LE: loop exit
PB: predicated region body
PF: predicated region fallthrough
CT: control target
= control target key end

     0   :  { %s2355_s0 = inlined_call_operand.vmem [shape: f32[8,128], index: 0, kind: input, shape index: {}]   ;;  %s2356_s1 = inlined_call_operand.hbm [shape: f32[128,128], index: 1, kind: input, shape index: {}]   ;;  %s2357_s2 = inlined_call_operand.hbm [shape: f32[128,128], index: 2, kind: input, shape index: {}]   ;;  %s2358_s3 = inlined_call_operand.hbm [shape: f32[128,128], index: 3, kind: input, shape index: {}]   ;;  %s2359_s4 = inlined_call_operand.hbm [shape: f32[128,128], index: 4, kind: input, shape index: {}]   ;;  %s2360_s5 = inlined_call_operand.hbm [shape: f32[128,128], index: 5, kind: input, shape index: {}]   ;;  %s2361_s6 = inlined_call_operand.hbm [shape: f32[128,128], index: 6, kind: input, shape index: {}]   ;;  %s2362_s7 = inlined_call_operand.hbm [shape: f32[128,128], index: 7, kind: input, shape index: {}]   ;;  %s2363_s8 = inlined_call_operand.hbm [shape: f32[128,128], index: 8, kind: input, shape index: {}]   ;;  %s2364_s9 = inlined_call_operand.hbm [shape: f32[128,128], index: 9, kind: input, shape index: {}]   ;;  %s2365_s10 = inlined_call_operand.hbm [shape: f32[128,128], index: 10, kind: input, shape index: {}]   ;;  %s2366_s11 = inlined_call_operand.vmem [shape: f32[1,128], index: 11, kind: input, shape index: {}]   ;;  %s2367_s12 = inlined_call_operand.vmem [shape: f32[1,128], index: 12, kind: input, shape index: {}]   ;;  %s2368_s13 = inlined_call_operand.vmem [shape: f32[1,128], index: 13, kind: input, shape index: {}]   ;;  %s2369_s14 = inlined_call_operand.vmem [shape: f32[1,128], index: 14, kind: input, shape index: {}]   ;;  %s2370_s15 = inlined_call_operand.vmem [shape: f32[1,128], index: 15, kind: input, shape index: {}]   ;;  %s2371_s16 = inlined_call_operand.vmem [shape: f32[1,128], index: 16, kind: input, shape index: {}]   ;;  %s2372_s17 = inlined_call_operand.vmem [shape: f32[1,128], index: 17, kind: input, shape index: {}]   ;;  %s2373_s18 = inlined_call_operand.vmem [shape: f32[1,128], index: 18, kind: input, shape index: {}]   ;;  %s2374_s19 = inlined_call_operand.vmem [shape: f32[1,128], index: 19, kind: input, shape index: {}]   ;;  %s2375_s20 = inlined_call_operand.vmem [shape: f32[1,128], index: 20, kind: input, shape index: {}]   ;;  %s2376_s21 = inlined_call_operand.hbm [shape: f32[8,128], index: 21, kind: output, shape index: {}]  }
   0x1   :  { %2377 = sst [smem:[#allocation27_spill]] %s2355_s0 }
   0x2   :  { %2378 = sst [smem:[#allocation28_spill]] %s2356_s1 }
   0x3   :  { %2379 = sst [smem:[#allocation29_spill]] %s2357_s2 }
   0x4   :  { %2380 = sst [smem:[#allocation30_spill]] %s2358_s3 }
   0x5   :  { %2381 = sst [smem:[#allocation31_spill]] %s2359_s4 }
   0x6   :  { %2382 = sst [smem:[#allocation32_spill]] %s2360_s5 }
   0x7   :  { %26 = vsyncpa [#allocation3], 0 }
   0x8   :  { %27 = vsyncpa [#allocation6], 0 }
   0x9   :  { %28 = vsyncpa [#allocation9], 0 }
   0xa   :  { %29 = vsyncpa [#allocation12], 0 }
   0xb   :  { %30 = vsyncpa [#allocation15], 0 }
   0xc   :  { %31 = vsyncpa [#allocation18], 0 }
   0xd   :  { %32 = vsyncpa [#allocation4], 0  ;;  %s1954_s2 = smov [#allocation5]   ;;  %s1955_s26 = smov [#allocation8]  }
   0xe   :  { %s52_s25 = sshll.u32 %s1954_s2, 4  ;;  %s76_s27 = sshll.u32 %s1955_s26, 4  ;;  %s53_s25 = int_to_ptr.vmem [resolvable:$true] %s52_s25  ;;  %s77_s27 = int_to_ptr.vmem [resolvable:$true] %s76_s27 }
   0xf   :  { %s1728_s3 = scalar_lea.vmem %s53_s25, 2048  ;;  %p1733_p1 = scmp.lt.s32.totalorder %s53_s25, %s53_s25 }
  0x10   :  { %p1729_p0 = scmp.ne.s32.totalorder %s53_s25, %s1728_s3  ;;  %p1734_p2 = scmp.lt.s32.totalorder %s1728_s3, %s1728_s3 }
  0x12   :  { %p1735_p3 = por %p1734_p2, %p1733_p1 }
  0x14   :  { %p1736_p4 = pnand %p1735_p3, %p1729_p0 }
  0x16   :  { %1739 = shalt.err (!%p1736_p4)
}
  0x17   :  { %s1956_s28 = smov 128   ;;  %s1957_s29 = smov 8  }
  0x18   :  { %s2383_s30 = sld [smem:[#allocation29_spill]]  ;;  %s1748_s5 = scalar_lea.vmem %s77_s27, 2048 }
  0x19   :  { %p1749_p5 = scmp.ne.s32.totalorder %s77_s27, %s1748_s5  ;;  %p1753_p6 = scmp.lt.s32.totalorder %s77_s27, %s77_s27 }
  0x1a   :  { %p1754_p7 = scmp.lt.s32.totalorder %s1748_s5, %s1748_s5 }
  0x1c   :  { %p1755_p8 = por %p1754_p7, %p1753_p6 }
  0x1e   :  { %58 = dma.hbm_to_vmem [thread:$0]  %s2383_s30, 2048, %s53_s25, [#allocation6], %s1956_s28, %s1956_s28, %s1957_s29  }
  0x1f   :  { %p1756_p9 = pnand %p1755_p8, %p1749_p5 }
  0x21   :  { %1759 = shalt.err (!%p1756_p9)
}
  0x22   :  { %s2384_s1 = sld [smem:[#allocation31_spill]]  ;;  %s1958_s24 = smov [#allocation11]  }
  0x23   :  { %s100_s2 = sshll.u32 %s1958_s24, 4  ;;  %s1959_s26 = smov [#allocation14]   ;;  %s101_s2 = int_to_ptr.vmem [resolvable:$true] %s100_s2 }
  0x24   :  { %s124_s3 = sshll.u32 %s1959_s26, 4  ;;  %s1768_s25 = scalar_lea.vmem %s101_s2, 2048  ;;  %s125_s3 = int_to_ptr.vmem [resolvable:$true] %s124_s3 }
  0x25   :  { %p1769_p10 = scmp.ne.s32.totalorder %s101_s2, %s1768_s25  ;;  %p1773_p11 = scmp.lt.s32.totalorder %s101_s2, %s101_s2 }
  0x26   :  { %p1774_p12 = scmp.lt.s32.totalorder %s1768_s25, %s1768_s25 }
  0x28   :  { %82 = dma.hbm_to_vmem [thread:$0]  %s2384_s1, 2048, %s77_s27, [#allocation9], %s1956_s28, %s1956_s28, %s1957_s29  }
  0x29   :  { %p1775_p13 = por %p1774_p12, %p1773_p11 }
  0x2b   :  { %p1776_p0 = pnand %p1775_p13, %p1769_p10 }
  0x2d   :  { %1779 = shalt.err (!%p1776_p0)
}
  0x2e   :  { %106 = dma.hbm_to_vmem [thread:$0]  %s2361_s6, 2048, %s101_s2, [#allocation12], %s1956_s28, %s1956_s28, %s1957_s29  }
  0x2f   :  { %s1788_s27 = scalar_lea.vmem %s125_s3, 2048  ;;  %p1793_p2 = scmp.lt.s32.totalorder %s125_s3, %s125_s3 }
  0x30   :  { %p1789_p1 = scmp.ne.s32.totalorder %s125_s3, %s1788_s27  ;;  %p1794_p3 = scmp.lt.s32.totalorder %s1788_s27, %s1788_s27 }
  0x32   :  { %p1795_p4 = por %p1794_p3, %p1793_p2 }
  0x34   :  { %p1796_p5 = pnand %p1795_p4, %p1789_p1 }
  0x36   :  { %1799 = shalt.err (!%p1796_p5)
}
  0x37   :  { %130 = dma.hbm_to_vmem [thread:$0]  %s2363_s8, 2048, %s125_s3, [#allocation15], %s1956_s28, %s1956_s28, %s1957_s29  }
  0x38   :  { %s1960_s22 = smov [#allocation2]   ;;  %s1961_s1 = smov [#allocation7]  }
  0x39   :  { %s40_s23 = sshll.u32 %s1960_s22, 4  ;;  %s64_s24 = sshll.u32 %s1961_s1, 4  ;;  %s41_s23 = int_to_ptr.vmem [resolvable:$true] %s40_s23  ;;  %s65_s24 = int_to_ptr.vmem [resolvable:$true] %s64_s24 }
  0x3a   :  { %s1808_s6 = scalar_lea.vmem %s41_s23, 2048  ;;  %p1813_p7 = scmp.lt.s32.totalorder %s41_s23, %s41_s23 }
  0x3b   :  { %p1809_p6 = scmp.ne.s32.totalorder %s41_s23, %s1808_s6  ;;  %p1814_p8 = scmp.lt.s32.totalorder %s1808_s6, %s1808_s6 }
  0x3d   :  { %p1815_p9 = por %p1814_p8, %p1813_p7 }
  0x3f   :  { %p1816_p10 = pnand %p1815_p9, %p1809_p6 }
  0x41   :  { %1819 = shalt.err (!%p1816_p10)
}
  0x42   :  { %s2385_s25 = sld [smem:[#allocation28_spill]]  ;;  %s1828_s8 = scalar_lea.vmem %s65_s24, 2048 }
  0x43   :  { %p1829_p11 = scmp.ne.s32.totalorder %s65_s24, %s1828_s8  ;;  %p1833_p12 = scmp.lt.s32.totalorder %s65_s24, %s65_s24 }
  0x44   :  { %p1834_p13 = scmp.lt.s32.totalorder %s1828_s8, %s1828_s8 }
  0x46   :  { %p1835_p0 = por %p1834_p13, %p1833_p12 }
  0x48   :  { %46 = dma.hbm_to_vmem [thread:$0]  %s2385_s25, 2048, %s41_s23, [#allocation3], %s1956_s28, %s1956_s28, %s1957_s29  }
  0x49   :  { %p1836_p1 = pnand %p1835_p0, %p1829_p11 }
  0x4b   :  { %1839 = shalt.err (!%p1836_p1)
}
  0x4c   :  { %s2386_s4 = sld [smem:[#allocation30_spill]]  ;;  %s1962_s27 = smov [#allocation10]  }
  0x4d   :  { %s88_s30 = sshll.u32 %s1962_s27, 4  ;;  %s1963_s5 = smov [#allocation13]   ;;  %s89_s30 = int_to_ptr.vmem [resolvable:$true] %s88_s30 }
  0x4e   :  { %s112_s22 = sshll.u32 %s1963_s5, 4  ;;  %s1848_s23 = scalar_lea.vmem %s89_s30, 2048  ;;  %s113_s22 = int_to_ptr.vmem [resolvable:$true] %s112_s22 }
  0x4f   :  { %p1849_p2 = scmp.ne.s32.totalorder %s89_s30, %s1848_s23  ;;  %p1853_p3 = scmp.lt.s32.totalorder %s89_s30, %s89_s30 }
  0x50   :  { %p1854_p4 = scmp.lt.s32.totalorder %s1848_s23, %s1848_s23 }
  0x52   :  { %70 = dma.hbm_to_vmem [thread:$0]  %s2386_s4, 2048, %s65_s24, [#allocation6], %s1956_s28, %s1956_s28, %s1957_s29  }
  0x53   :  { %p1855_p5 = por %p1854_p4, %p1853_p3 }
  0x55   :  { %p1856_p6 = pnand %p1855_p5, %p1849_p2 }
  0x57   :  { %1859 = shalt.err (!%p1856_p6)
}
  0x58   :  { %s2387_s2 = sld [smem:[#allocation32_spill]]  ;;  %s1868_s24 = scalar_lea.vmem %s113_s22, 2048 }
  0x59   :  { %p1869_p7 = scmp.ne.s32.totalorder %s113_s22, %s1868_s24  ;;  %p1873_p8 = scmp.lt.s32.totalorder %s113_s22, %s113_s22 }
  0x5a   :  { %p1874_p9 = scmp.lt.s32.totalorder %s1868_s24, %s1868_s24 }
  0x5c   :  { %p1875_p10 = por %p1874_p9, %p1873_p8 }
  0x5e   :  { %94 = dma.hbm_to_vmem [thread:$0]  %s2387_s2, 2048, %s89_s30, [#allocation9], %s1956_s28, %s1956_s28, %s1957_s29  }
  0x5f   :  { %p1876_p11 = pnand %p1875_p10, %p1869_p7 }
  0x61   :  { %1879 = shalt.err (!%p1876_p11)
}
  0x62   :  { %118 = dma.hbm_to_vmem [thread:$0]  %s2362_s7, 2048, %s113_s22, [#allocation12], %s1956_s28, %s1956_s28, %s1957_s29  }
  0x63   :  { %s1964_s8 = smov [#allocation16]   ;;  %s1965_s0 = smov [#allocation17]  }
  0x64   :  { %s136_s3 = sshll.u32 %s1964_s8, 4  ;;  %s148_s4 = sshll.u32 %s1965_s0, 4  ;;  %s137_s3 = int_to_ptr.vmem [resolvable:$true] %s136_s3  ;;  %s149_s4 = int_to_ptr.vmem [resolvable:$true] %s148_s4 }
  0x65   :  { %s1888_s27 = scalar_lea.vmem %s137_s3, 2048  ;;  %p1893_p13 = scmp.lt.s32.totalorder %s137_s3, %s137_s3 }
  0x66   :  { %p1889_p12 = scmp.ne.s32.totalorder %s137_s3, %s1888_s27  ;;  %p1894_p0 = scmp.lt.s32.totalorder %s1888_s27, %s1888_s27 }
  0x68   :  { %p1895_p1 = por %p1894_p0, %p1893_p13 }
  0x6a   :  { %p1896_p2 = pnand %p1895_p1, %p1889_p12 }
  0x6c   :  { %1899 = shalt.err (!%p1896_p2)
}
  0x6d   :  { %142 = dma.hbm_to_vmem [thread:$0]  %s2364_s9, 2048, %s137_s3, [#allocation15], %s1956_s28, %s1956_s28, %s1957_s29  }
  0x6e   :  { %s1908_s7 = scalar_lea.vmem %s149_s4, 2048  ;;  %p1913_p4 = scmp.lt.s32.totalorder %s149_s4, %s149_s4 }
  0x6f   :  { %p1909_p3 = scmp.ne.s32.totalorder %s149_s4, %s1908_s7  ;;  %p1914_p5 = scmp.lt.s32.totalorder %s1908_s7, %s1908_s7 }
  0x71   :  { %p1915_p6 = por %p1914_p5, %p1913_p4 }
  0x73   :  { %p1916_p7 = pnand %p1915_p6, %p1909_p3 }
  0x75   :  { %1919 = shalt.err (!%p1916_p7)
}
  0x76   :  { %154 = dma.hbm_to_vmem [thread:$0]  %s2365_s10, 2048, %s149_s4, [#allocation18], %s1956_s28, %s1956_s28, %s1957_s29  }
  0x77   :  { %1940 = dma.done.wait [#allocation3], 2048  }
  0x78   :  { %1941 = vsyncadd [#allocation3], 4294965248 }
  0x79   :  { %1942 = dma.done.wait [#allocation6], 4096  }
  0x7a   :  { %1943 = vsyncadd [#allocation6], 4294963200 }
  0x7b   :  { %1944 = dma.done.wait [#allocation9], 4096  }
  0x7c   :  { %1945 = vsyncadd [#allocation9], 4294963200 }
  0x7d   :  { %1946 = dma.done.wait [#allocation12], 4096  }
  0x7e   :  { %1947 = vsyncadd [#allocation12], 4294963200 }
  0x7f   :  { %1948 = dma.done.wait [#allocation15], 4096  }
  0x80   :  { %1949 = vsyncadd [#allocation15], 4294963200 }
  0x81   :  { %1950 = dma.done.wait [#allocation18], 2048  }
  0x82   :  { %1951 = vsyncadd [#allocation18], 4294965248  ;;  %v1966_v0 = vmov 0.0   ;;  %vm1967_vm0 = vmmov 0   ;;  %v221_v1 = vld [vmem:[#allocation2 + $0x78] sm:$0xff]  ;;  %v220_v2 = vld [vmem:[#allocation2 + $0x70] sm:$0xff] }
  0x83   :  { %1355 = vmatprep.subr.mxu0 %v1966_v0  ;;  %1387 = vmatprep.mubr.msk.f32.mxu0 %vm1967_vm0, %v1966_v0  ;;  %v219_v3 = vld [vmem:[#allocation2 + $0x68] sm:$0xff]  ;;  %v218_v4 = vld [vmem:[#allocation2 + $0x60] sm:$0xff]  ;;  %v316_v5 = vld [vmem:[#allocation5 + $0x78] sm:$0xff]  ;;  %s2388_s28 = sld [smem:[#allocation27_spill]]  ;;  %s1968_s30 = smov [#allocation19]  }
  0x84   :  { %1390 = vmatprep.subr.mxu1 %v1966_v0  ;;  %1422 = vmatprep.mubr.msk.f32.mxu1 %vm1967_vm0, %v1966_v0  ;;  %v217_v6 = vld [vmem:[#allocation2 + $0x58] sm:$0xff]  ;;  %v315_v7 = vld [vmem:[#allocation5 + $0x70] sm:$0xff]  ;;  %v314_v8 = vld [vmem:[#allocation5 + $0x68] sm:$0xff]  ;;  %s1161_s5 = sshll.u32 %s1968_s30, 4  ;;  %s1162_s5 = int_to_ptr.vmem [resolvable:$true] %s1161_s5 }
  0x85   :  { %1356 = vmatpush3.msra.mxu0 %v221_v1  ;;  %1391 = vmatpush3.msra.mxu1 %v316_v5  ;;  %v216_v9 = vld [vmem:[#allocation2 + $0x50] sm:$0xff]  ;;  %v313_v10 = vld [vmem:[#allocation5 + $0x60] sm:$0xff]  ;;  %v215_v11 = vld [vmem:[#allocation2 + $0x48] sm:$0xff]  ;;  %s1920_s7 = scalar_lea.vmem %s1162_s5, 128  ;;  %p1925_p9 = scmp.lt.s32.totalorder %s1162_s5, %s1162_s5 }
  0x86   :  { %1357 = vmatprep.subr.mxu0 %v1966_v0  ;;  %1392 = vmatprep.subr.mxu1 %v1966_v0  ;;  %v312_v12 = vld [vmem:[#allocation5 + $0x58] sm:$0xff]  ;;  %v214_v13 = vld [vmem:[#allocation2 + $0x40] sm:$0xff]  ;;  %v311_v14 = vld [vmem:[#allocation5 + $0x50] sm:$0xff]  ;;  %p1921_p8 = scmp.ne.s32.totalorder %s1162_s5, %s1920_s7  ;;  %p1926_p10 = scmp.lt.s32.totalorder %s1920_s7, %s1920_s7 }
  0x87   :  { %1358 = vmatpush3.msra.mxu0 %v220_v2  ;;  %1393 = vmatpush3.msra.mxu1 %v315_v7  ;;  %v213_v15 = vld [vmem:[#allocation2 + $0x38] sm:$0xff]  ;;  %v310_v16 = vld [vmem:[#allocation5 + $0x48] sm:$0xff]  ;;  %v212_v17 = vld [vmem:[#allocation2 + $0x30] sm:$0xff] }
  0x88   :  { %1359 = vmatprep.subr.mxu0 %v1966_v0  ;;  %1394 = vmatprep.subr.mxu1 %v1966_v0  ;;  %v309_v18 = vld [vmem:[#allocation5 + $0x40] sm:$0xff]  ;;  %v211_v19 = vld [vmem:[#allocation2 + $0x28] sm:$0xff]  ;;  %v308_v20 = vld [vmem:[#allocation5 + $0x38] sm:$0xff]  ;;  %p1927_p11 = por %p1926_p10, %p1925_p9 }
  0x89   :  { %1360 = vmatpush3.msra.mxu0 %v219_v3  ;;  %1395 = vmatpush3.msra.mxu1 %v314_v8  ;;  %v210_v21 = vld [vmem:[#allocation2 + $0x20] sm:$0xff]  ;;  %v307_v22 = vld [vmem:[#allocation5 + $0x30] sm:$0xff]  ;;  %v209_v23 = vld [vmem:[#allocation2 + $0x18] sm:$0xff] }
  0x8a   :  { %1361 = vmatprep.subr.mxu0 %v1966_v0  ;;  %1396 = vmatprep.subr.mxu1 %v1966_v0  ;;  %v306_v24 = vld [vmem:[#allocation5 + $0x28] sm:$0xff]  ;;  %v208_v25 = vld [vmem:[#allocation2 + $0x10] sm:$0xff]  ;;  %v305_v26 = vld [vmem:[#allocation5 + $0x20] sm:$0xff]  ;;  %p1928_p12 = pnand %p1927_p11, %p1921_p8 }
  0x8b   :  { %1362 = vmatpush3.msra.mxu0 %v218_v4  ;;  %1397 = vmatpush3.msra.mxu1 %v313_v10  ;;  %v207_v27 = vld [vmem:[#allocation2 + $0x8] sm:$0xff]  ;;  %v206_v28 = vld [vmem:[#allocation2] sm:$0xff]  ;;  %v304_v30 = vld [vmem:[#allocation5 + $0x18] sm:$0xff] }
  0x8c   :  { %1363 = vmatprep.subr.mxu0 %v1966_v0  ;;  %1398 = vmatprep.subr.mxu1 %v1966_v0  ;;  %v205_v29 = vld [vmem:[%s2388_s28] sm:$0xff]  ;;  %v303_v31 = vld [vmem:[#allocation5 + $0x10] sm:$0xff]  ;;  %v302_v32 = vld [vmem:[#allocation5 + $0x8] sm:$0xff] }
  0x8d   :  { %1364 = vmatpush3.msra.mxu0 %v217_v6  ;;  %1399 = vmatpush3.msra.mxu1 %v312_v12  ;;  %v301_v33 = vld [vmem:[#allocation5] sm:$0xff]  ;;  %v411_v34 = vld [vmem:[#allocation7 + $0x78] sm:$0xff]  ;;  %v410_v35 = vld [vmem:[#allocation7 + $0x70] sm:$0xff] }
  0x8e   :  { %1365 = vmatprep.subr.mxu0 %v1966_v0  ;;  %1400 = vmatprep.subr.mxu1 %v1966_v0  ;;  %v409_v36 = vld [vmem:[#allocation7 + $0x68] sm:$0xff]  ;;  %v408_v37 = vld [vmem:[#allocation7 + $0x60] sm:$0xff]  ;;  %v407_v38 = vld [vmem:[#allocation7 + $0x58] sm:$0xff] }
  0x8f   :  { %1366 = vmatpush3.msra.mxu0 %v216_v9  ;;  %1401 = vmatpush3.msra.mxu1 %v311_v14  ;;  %v406_v39 = vld [vmem:[#allocation7 + $0x50] sm:$0xff]  ;;  %v405_v40 = vld [vmem:[#allocation7 + $0x48] sm:$0xff]  ;;  %v404_v41 = vld [vmem:[#allocation7 + $0x40] sm:$0xff] }
  0x90   :  { %1367 = vmatprep.subr.mxu0 %v1966_v0  ;;  %1402 = vmatprep.subr.mxu1 %v1966_v0  ;;  %v403_v42 = vld [vmem:[#allocation7 + $0x38] sm:$0xff]  ;;  %v402_v43 = vld [vmem:[#allocation7 + $0x30] sm:$0xff]  ;;  %v401_v44 = vld [vmem:[#allocation7 + $0x28] sm:$0xff] }
  0x91   :  { %1368 = vmatpush3.msra.mxu0 %v215_v11  ;;  %1403 = vmatpush3.msra.mxu1 %v310_v16  ;;  %v400_v45 = vld [vmem:[#allocation7 + $0x20] sm:$0xff]  ;;  %v399_v52 = vld [vmem:[#allocation7 + $0x18] sm:$0xff]  ;;  %v398_v53 = vld [vmem:[#allocation7 + $0x10] sm:$0xff] }
  0x92   :  { %1369 = vmatprep.subr.mxu0 %v1966_v0  ;;  %1404 = vmatprep.subr.mxu1 %v1966_v0  ;;  %v1175_v46 = vld [vmem:[%s2366_s11] ss:$0 sm:$0xff]  ;;  %v397_v54 = vld [vmem:[#allocation7 + $0x8] sm:$0xff]  ;;  %v506_v56 = vld [vmem:[#allocation8 + $0x78] sm:$0xff] }
  0x93   :  { %1370 = vmatpush3.msra.mxu0 %v214_v13  ;;  %1405 = vmatpush3.msra.mxu1 %v309_v18  ;;  %v396_v55 = vld [vmem:[#allocation7] sm:$0xff]  ;;  %v505_v57 = vld [vmem:[#allocation8 + $0x70] sm:$0xff]  ;;  %v504_v58 = vld [vmem:[#allocation8 + $0x68] sm:$0xff] }
  0x94   :  { %1371 = vmatprep.subr.mxu0 %v1966_v0  ;;  %1406 = vmatprep.subr.mxu1 %v1966_v0  ;;  %v503_v59 = vld [vmem:[#allocation8 + $0x60] sm:$0xff]  ;;  %v502_v60 = vld [vmem:[#allocation8 + $0x58] sm:$0xff]  ;;  %v501_v61 = vld [vmem:[#allocation8 + $0x50] sm:$0xff] }
  0x95   :  { %1372 = vmatpush3.msra.mxu0 %v213_v15  ;;  %1407 = vmatpush3.msra.mxu1 %v308_v20  ;;  %v500_v62 = vld [vmem:[#allocation8 + $0x48] sm:$0xff]  ;;  %v499_v63 = vld [vmem:[#allocation8 + $0x40] sm:$0xff]  ;;  %v498_v1 = vld [vmem:[#allocation8 + $0x38] sm:$0xff] }
  0x96   :  { %1373 = vmatprep.subr.mxu0 %v1966_v0  ;;  %1408 = vmatprep.subr.mxu1 %v1966_v0  ;;  %v497_v2 = vld [vmem:[#allocation8 + $0x30] sm:$0xff]  ;;  %v496_v3 = vld [vmem:[#allocation8 + $0x28] sm:$0xff]  ;;  %v495_v4 = vld [vmem:[#allocation8 + $0x20] sm:$0xff] }
  0x97   :  { %1374 = vmatpush3.msra.mxu0 %v212_v17  ;;  %1409 = vmatpush3.msra.mxu1 %v307_v22  ;;  %v1176_v5 = vld [vmem:[%s2367_s12] ss:$0 sm:$0xff]  ;;  %v494_v11 = vld [vmem:[#allocation8 + $0x18] sm:$0xff]  ;;  %v493_v12 = vld [vmem:[#allocation8 + $0x10] sm:$0xff] }
  0x98   :  { %1375 = vmatprep.subr.mxu0 %v1966_v0  ;;  %1410 = vmatprep.subr.mxu1 %v1966_v0  ;;  %v492_v13 = vld [vmem:[#allocation8 + $0x8] sm:$0xff]  ;;  %v491_v14 = vld [vmem:[#allocation8] sm:$0xff]  ;;  %v601_v15 = vld [vmem:[#allocation10 + $0x78] sm:$0xff] }
  0x99   :  { %1376 = vmatpush3.msra.mxu0 %v211_v19  ;;  %1411 = vmatpush3.msra.mxu1 %v306_v24  ;;  %v600_v16 = vld [vmem:[#allocation10 + $0x70] sm:$0xff]  ;;  %v599_v17 = vld [vmem:[#allocation10 + $0x68] sm:$0xff]  ;;  %v598_v18 = vld [vmem:[#allocation10 + $0x60] sm:$0xff] }
  0x9a   :  { %1377 = vmatprep.subr.mxu0 %v1966_v0  ;;  %1412 = vmatprep.subr.mxu1 %v1966_v0  ;;  %v597_v19 = vld [vmem:[#allocation10 + $0x58] sm:$0xff]  ;;  %v596_v20 = vld [vmem:[#allocation10 + $0x50] sm:$0xff]  ;;  %v594_v22 = vld [vmem:[#allocation10 + $0x40] sm:$0xff] }
  0x9b   :  { %1378 = vmatpush3.msra.mxu0 %v210_v21  ;;  %1413 = vmatpush3.msra.mxu1 %v305_v26  ;;  %v595_v21 = vld [vmem:[#allocation10 + $0x48] sm:$0xff]  ;;  %v592_v24 = vld [vmem:[#allocation10 + $0x30] sm:$0xff]  ;;  %v590_v26 = vld [vmem:[#allocation10 + $0x20] sm:$0xff] }
  0x9c   :  { %1379 = vmatprep.subr.mxu0 %v1966_v0  ;;  %1414 = vmatprep.subr.mxu1 %v1966_v0 }
  0x9d   :  { %1380 = vmatpush3.msra.mxu0 %v209_v23  ;;  %1415 = vmatpush3.msra.mxu1 %v304_v30  ;;  %v593_v23 = vld [vmem:[#allocation10 + $0x38] sm:$0xff] }
  0x9e   :  { %1381 = vmatprep.subr.mxu0 %v1966_v0  ;;  %1416 = vmatprep.subr.mxu1 %v1966_v0 }
  0x9f   :  { %1382 = vmatpush3.msra.mxu0 %v208_v25  ;;  %1417 = vmatpush3.msra.mxu1 %v303_v31  ;;  %v591_v25 = vld [vmem:[#allocation10 + $0x28] sm:$0xff] }
  0xa0   :  { %1383 = vmatprep.subr.mxu0 %v1966_v0  ;;  %1418 = vmatprep.subr.mxu1 %v1966_v0 }
  0xa1   :  { %1384 = vmatpush3.msra.mxu0 %v207_v27  ;;  %1419 = vmatpush3.msra.mxu1 %v302_v32  ;;  %v1177_v27 = vld [vmem:[%s2368_s13] ss:$0 sm:$0xff] }
  0xa2   :  { %1385 = vmatprep.subr.mxu0 %v1966_v0  ;;  %1420 = vmatprep.subr.mxu1 %v1966_v0 }
  0xa3   :  { %1386 = vmatpush3.msra.mxu0 %v206_v28  ;;  %1421 = vmatpush3.msra.mxu1 %v301_v33  ;;  %v589_v33 = vld [vmem:[#allocation10 + $0x18] sm:$0xff] }
  0xa4   :  { %1388 = vmatmul.mubr.f32.vlgmr.msra.gmra.mxu0 %v205_v29  ;;  %1425 = vmatprep.subr.mxu0 %v1966_v0 }
  0xa5   :  { %1457 = vmatprep.mubr.msk.f32.mxu0 %vm1967_vm0, %v1966_v0  ;;  %1460 = vmatprep.subr.mxu1 %v1966_v0 }
  0xa6   :  { %1426 = vmatpush3.msra.mxu0 %v411_v34  ;;  %v588_v34 = vld [vmem:[#allocation10 + $0x10] sm:$0xff] }
  0xa7   :  { %1427 = vmatprep.subr.mxu0 %v1966_v0 }
  0xa8   :  { %1428 = vmatpush3.msra.mxu0 %v410_v35  ;;  %v587_v35 = vld [vmem:[#allocation10 + $0x8] sm:$0xff] }
  0xa9   :  { %1429 = vmatprep.subr.mxu0 %v1966_v0 }
  0xaa   :  { %1430 = vmatpush3.msra.mxu0 %v409_v36  ;;  %v586_v36 = vld [vmem:[#allocation10] sm:$0xff] }
  0xab   :  { %1431 = vmatprep.subr.mxu0 %v1966_v0 }
  0xac   :  { %1432 = vmatpush3.msra.mxu0 %v408_v37  ;;  %v696_v37 = vld [vmem:[#allocation11 + $0x78] sm:$0xff] }
  0xad   :  { %1433 = vmatprep.subr.mxu0 %v1966_v0 }
  0xae   :  { %1434 = vmatpush3.msra.mxu0 %v407_v38  ;;  %v695_v38 = vld [vmem:[#allocation11 + $0x70] sm:$0xff] }
  0xaf   :  { %1435 = vmatprep.subr.mxu0 %v1966_v0 }
  0xb0   :  { %1436 = vmatpush3.msra.mxu0 %v406_v39  ;;  %v694_v39 = vld [vmem:[#allocation11 + $0x68] sm:$0xff] }
  0xb1   :  { %1437 = vmatprep.subr.mxu0 %v1966_v0 }
  0xb2   :  { %1438 = vmatpush3.msra.mxu0 %v405_v40  ;;  %v693_v40 = vld [vmem:[#allocation11 + $0x60] sm:$0xff] }
  0xb3   :  { %1439 = vmatprep.subr.mxu0 %v1966_v0 }
  0xb4   :  { %1440 = vmatpush3.msra.mxu0 %v404_v41  ;;  %v692_v41 = vld [vmem:[#allocation11 + $0x58] sm:$0xff] }
  0xb5   :  { %1441 = vmatprep.subr.mxu0 %v1966_v0 }
  0xb6   :  { %1442 = vmatpush3.msra.mxu0 %v403_v42  ;;  %v691_v42 = vld [vmem:[#allocation11 + $0x50] sm:$0xff] }
  0xb7   :  { %1443 = vmatprep.subr.mxu0 %v1966_v0 }
  0xb8   :  { %1444 = vmatpush3.msra.mxu0 %v402_v43  ;;  %v690_v43 = vld [vmem:[#allocation11 + $0x48] sm:$0xff] }
  0xb9   :  { %1445 = vmatprep.subr.mxu0 %v1966_v0 }
  0xba   :  { %1446 = vmatpush3.msra.mxu0 %v401_v44  ;;  %v689_v44 = vld [vmem:[#allocation11 + $0x40] sm:$0xff] }
  0xbb   :  { %1447 = vmatprep.subr.mxu0 %v1966_v0 }
  0xbc   :  { %1448 = vmatpush3.msra.mxu0 %v400_v45  ;;  %v688_v45 = vld [vmem:[#allocation11 + $0x38] sm:$0xff] }
  0xbd   :  { %1449 = vmatprep.subr.mxu0 %v1966_v0 }
  0xbe   :  { %1450 = vmatpush3.msra.mxu0 %v399_v52 }
  0xbf   :  { %1451 = vmatprep.subr.mxu0 %v1966_v0 }
  0xc0   :  { %1452 = vmatpush3.msra.mxu0 %v398_v53 }
  0xc1   :  { %1453 = vmatprep.subr.mxu0 %v1966_v0 }
  0xc2   :  { %1454 = vmatpush3.msra.mxu0 %v397_v54 }
  0xc3   :  { %1455 = vmatprep.subr.mxu0 %v1966_v0 }
  0xc4   :  { %1456 = vmatpush3.msra.mxu0 %v396_v55  ;;  %v684_v55 = vld [vmem:[#allocation11 + $0x18] sm:$0xff] }
  0xc5   :  { %1495 = vmatprep.subr.mxu0 %v1966_v0 }
 0x164   :  { %v295_v47 = vpop.f32.mrf.mxu0 }
 0x165   :  { %v296_v48 = vadd.f32 %v1175_v46, %v295_v47  ;;  %v687_v46 = vld [vmem:[#allocation11 + $0x30] sm:$0xff]  ;;  %v686_v47 = vld [vmem:[#allocation11 + $0x28] sm:$0xff] }
 0x166   :  { %v1389_v49 = vpop.f32.mrf.mxu0 }
 0x167   :  { %v299_v50 = vmul.f32 0.2, %v296_v48  ;;  %v1178_v49 = vld [vmem:[%s2369_s14] ss:$0 sm:$0xff] }
 0x169   :  { %v300_v51 = vmax.f32 %v296_v48, %v299_v50  ;;  %v685_v48 = vld [vmem:[#allocation11 + $0x20] sm:$0xff] }
 0x16b   :  { %1423 = vmatmul.mubr.f32.vlgmr.msra.gmra.mxu1 %v300_v51 }
 0x16c   :  { %1492 = vmatprep.mubr.msk.f32.mxu1 %vm1967_vm0, %v1966_v0  ;;  %1461 = vmatpush3.msra.mxu1 %v506_v56  ;;  %v683_v56 = vld [vmem:[#allocation11 + $0x10] sm:$0xff] }
 0x16d   :  { %1462 = vmatprep.subr.mxu1 %v1966_v0 }
 0x16e   :  { %1463 = vmatpush3.msra.mxu1 %v505_v57  ;;  %v682_v57 = vld [vmem:[#allocation11 + $0x8] sm:$0xff] }
 0x16f   :  { %1464 = vmatprep.subr.mxu1 %v1966_v0 }
 0x170   :  { %1465 = vmatpush3.msra.mxu1 %v504_v58  ;;  %v681_v58 = vld [vmem:[#allocation11] sm:$0xff] }
 0x171   :  { %1466 = vmatprep.subr.mxu1 %v1966_v0 }
 0x172   :  { %1467 = vmatpush3.msra.mxu1 %v503_v59  ;;  %v791_v59 = vld [vmem:[#allocation13 + $0x78] sm:$0xff] }
 0x173   :  { %1468 = vmatprep.subr.mxu1 %v1966_v0 }
 0x174   :  { %1469 = vmatpush3.msra.mxu1 %v502_v60  ;;  %v790_v60 = vld [vmem:[#allocation13 + $0x70] sm:$0xff] }
 0x175   :  { %1470 = vmatprep.subr.mxu1 %v1966_v0 }
 0x176   :  { %1471 = vmatpush3.msra.mxu1 %v501_v61  ;;  %v789_v61 = vld [vmem:[#allocation13 + $0x68] sm:$0xff] }
 0x177   :  { %1472 = vmatprep.subr.mxu1 %v1966_v0 }
 0x178   :  { %1473 = vmatpush3.msra.mxu1 %v500_v62  ;;  %v788_v62 = vld [vmem:[#allocation13 + $0x60] sm:$0xff] }
 0x179   :  { %1474 = vmatprep.subr.mxu1 %v1966_v0 }
 0x17a   :  { %1475 = vmatpush3.msra.mxu1 %v499_v63  ;;  %v787_v63 = vld [vmem:[#allocation13 + $0x58] sm:$0xff] }
 0x17b   :  { %1476 = vmatprep.subr.mxu1 %v1966_v0 }
 0x17c   :  { %1477 = vmatpush3.msra.mxu1 %v498_v1  ;;  %v786_v1 = vld [vmem:[#allocation13 + $0x50] sm:$0xff] }
 0x17d   :  { %1478 = vmatprep.subr.mxu1 %v1966_v0 }
 0x17e   :  { %1479 = vmatpush3.msra.mxu1 %v497_v2  ;;  %v785_v2 = vld [vmem:[#allocation13 + $0x48] sm:$0xff] }
 0x17f   :  { %1480 = vmatprep.subr.mxu1 %v1966_v0 }
 0x180   :  { %1481 = vmatpush3.msra.mxu1 %v496_v3  ;;  %v784_v3 = vld [vmem:[#allocation13 + $0x40] sm:$0xff] }
 0x181   :  { %1482 = vmatprep.subr.mxu1 %v1966_v0 }
 0x182   :  { %1483 = vmatpush3.msra.mxu1 %v495_v4  ;;  %v783_v4 = vld [vmem:[#allocation13 + $0x38] sm:$0xff] }
 0x183   :  { %1484 = vmatprep.subr.mxu1 %v1966_v0 }
 0x184   :  { %1485 = vmatpush3.msra.mxu1 %v494_v11 }
 0x185   :  { %1486 = vmatprep.subr.mxu1 %v1966_v0 }
 0x186   :  { %1487 = vmatpush3.msra.mxu1 %v493_v12 }
 0x187   :  { %1488 = vmatprep.subr.mxu1 %v1966_v0 }
 0x188   :  { %1489 = vmatpush3.msra.mxu1 %v492_v13 }
 0x189   :  { %1490 = vmatprep.subr.mxu1 %v1966_v0 }
 0x18a   :  { %1491 = vmatpush3.msra.mxu1 %v491_v14  ;;  %v779_v14 = vld [vmem:[#allocation13 + $0x18] sm:$0xff] }
 0x18b   :  { %1530 = vmatprep.subr.mxu1 %v1966_v0 }
 0x22b   :  { %v390_v6 = vpop.f32.mrf.mxu1 }
 0x22c   :  { %v391_v7 = vadd.f32 %v1176_v5, %v390_v6  ;;  %v782_v5 = vld [vmem:[#allocation13 + $0x30] sm:$0xff]  ;;  %v781_v6 = vld [vmem:[#allocation13 + $0x28] sm:$0xff] }
 0x22d   :  { %v1424_v8 = vpop.f32.mrf.mxu1 }
 0x22e   :  { %v394_v9 = vmul.f32 0.2, %v391_v7  ;;  %v1179_v8 = vld [vmem:[%s2370_s15] ss:$0 sm:$0xff] }
 0x230   :  { %v395_v10 = vmax.f32 %v391_v7, %v394_v9  ;;  %v780_v7 = vld [vmem:[#allocation13 + $0x20] sm:$0xff] }
 0x232   :  { %1458 = vmatmul.mubr.f32.vlgmr.msra.gmra.mxu0 %v395_v10 }
 0x233   :  { %1527 = vmatprep.mubr.msk.f32.mxu0 %vm1967_vm0, %v1966_v0  ;;  %1496 = vmatpush3.msra.mxu0 %v601_v15  ;;  %v778_v15 = vld [vmem:[#allocation13 + $0x10] sm:$0xff] }
 0x234   :  { %1497 = vmatprep.subr.mxu0 %v1966_v0 }
 0x235   :  { %1498 = vmatpush3.msra.mxu0 %v600_v16  ;;  %v777_v16 = vld [vmem:[#allocation13 + $0x8] sm:$0xff] }
 0x236   :  { %1499 = vmatprep.subr.mxu0 %v1966_v0 }
 0x237   :  { %1500 = vmatpush3.msra.mxu0 %v599_v17  ;;  %v776_v17 = vld [vmem:[#allocation13] sm:$0xff] }
 0x238   :  { %1501 = vmatprep.subr.mxu0 %v1966_v0 }
 0x239   :  { %1502 = vmatpush3.msra.mxu0 %v598_v18  ;;  %v886_v18 = vld [vmem:[#allocation14 + $0x78] sm:$0xff] }
 0x23a   :  { %1503 = vmatprep.subr.mxu0 %v1966_v0 }
 0x23b   :  { %1504 = vmatpush3.msra.mxu0 %v597_v19  ;;  %v885_v19 = vld [vmem:[#allocation14 + $0x70] sm:$0xff] }
 0x23c   :  { %1505 = vmatprep.subr.mxu0 %v1966_v0 }
 0x23d   :  { %1506 = vmatpush3.msra.mxu0 %v596_v20  ;;  %v884_v20 = vld [vmem:[#allocation14 + $0x68] sm:$0xff] }
 0x23e   :  { %1507 = vmatprep.subr.mxu0 %v1966_v0 }
 0x23f   :  { %1508 = vmatpush3.msra.mxu0 %v595_v21  ;;  %v883_v21 = vld [vmem:[#allocation14 + $0x60] sm:$0xff] }
 0x240   :  { %1509 = vmatprep.subr.mxu0 %v1966_v0 }
 0x241   :  { %1510 = vmatpush3.msra.mxu0 %v594_v22  ;;  %v882_v22 = vld [vmem:[#allocation14 + $0x58] sm:$0xff] }
 0x242   :  { %1511 = vmatprep.subr.mxu0 %v1966_v0 }
 0x243   :  { %1512 = vmatpush3.msra.mxu0 %v593_v23  ;;  %v881_v23 = vld [vmem:[#allocation14 + $0x50] sm:$0xff] }
 0x244   :  { %1513 = vmatprep.subr.mxu0 %v1966_v0 }
 0x245   :  { %1514 = vmatpush3.msra.mxu0 %v592_v24  ;;  %v880_v24 = vld [vmem:[#allocation14 + $0x48] sm:$0xff] }
 0x246   :  { %1515 = vmatprep.subr.mxu0 %v1966_v0 }
 0x247   :  { %1516 = vmatpush3.msra.mxu0 %v591_v25  ;;  %v879_v25 = vld [vmem:[#allocation14 + $0x40] sm:$0xff] }
 0x248   :  { %1517 = vmatprep.subr.mxu0 %v1966_v0 }
 0x249   :  { %1518 = vmatpush3.msra.mxu0 %v590_v26  ;;  %v878_v26 = vld [vmem:[#allocation14 + $0x38] sm:$0xff] }
 0x24a   :  { %1519 = vmatprep.subr.mxu0 %v1966_v0 }
 0x24b   :  { %1520 = vmatpush3.msra.mxu0 %v589_v33 }
 0x24c   :  { %1521 = vmatprep.subr.mxu0 %v1966_v0 }
 0x24d   :  { %1522 = vmatpush3.msra.mxu0 %v588_v34 }
 0x24e   :  { %1523 = vmatprep.subr.mxu0 %v1966_v0 }
 0x24f   :  { %1524 = vmatpush3.msra.mxu0 %v587_v35 }
 0x250   :  { %1525 = vmatprep.subr.mxu0 %v1966_v0 }
 0x251   :  { %1526 = vmatpush3.msra.mxu0 %v586_v36  ;;  %v874_v36 = vld [vmem:[#allocation14 + $0x18] sm:$0xff] }
 0x252   :  { %1565 = vmatprep.subr.mxu0 %v1966_v0 }
 0x2f2   :  { %v485_v28 = vpop.f32.mrf.mxu0 }
 0x2f3   :  { %v486_v29 = vadd.f32 %v1177_v27, %v485_v28  ;;  %v877_v27 = vld [vmem:[#allocation14 + $0x30] sm:$0xff]  ;;  %v876_v28 = vld [vmem:[#allocation14 + $0x28] sm:$0xff] }
 0x2f4   :  { %v1459_v30 = vpop.f32.mrf.mxu0 }
 0x2f5   :  { %v489_v31 = vmul.f32 0.2, %v486_v29  ;;  %v1180_v30 = vld [vmem:[%s2371_s16] ss:$0 sm:$0xff] }
 0x2f7   :  { %v490_v32 = vmax.f32 %v486_v29, %v489_v31  ;;  %v875_v29 = vld [vmem:[#allocation14 + $0x20] sm:$0xff] }
 0x2f9   :  { %1493 = vmatmul.mubr.f32.vlgmr.msra.gmra.mxu1 %v490_v32 }
 0x2fa   :  { %1562 = vmatprep.mubr.msk.f32.mxu1 %vm1967_vm0, %v1966_v0  ;;  %1531 = vmatpush3.msra.mxu1 %v696_v37  ;;  %v873_v37 = vld [vmem:[#allocation14 + $0x10] sm:$0xff] }
 0x2fb   :  { %1532 = vmatprep.subr.mxu1 %v1966_v0 }
 0x2fc   :  { %1533 = vmatpush3.msra.mxu1 %v695_v38  ;;  %v872_v38 = vld [vmem:[#allocation14 + $0x8] sm:$0xff] }
 0x2fd   :  { %1534 = vmatprep.subr.mxu1 %v1966_v0 }
 0x2fe   :  { %1535 = vmatpush3.msra.mxu1 %v694_v39  ;;  %v871_v39 = vld [vmem:[#allocation14] sm:$0xff] }
 0x2ff   :  { %1536 = vmatprep.subr.mxu1 %v1966_v0 }
 0x300   :  { %1537 = vmatpush3.msra.mxu1 %v693_v40  ;;  %v981_v40 = vld [vmem:[#allocation16 + $0x78] sm:$0xff] }
 0x301   :  { %1538 = vmatprep.subr.mxu1 %v1966_v0 }
 0x302   :  { %1539 = vmatpush3.msra.mxu1 %v692_v41  ;;  %v980_v41 = vld [vmem:[#allocation16 + $0x70] sm:$0xff] }
 0x303   :  { %1540 = vmatprep.subr.mxu1 %v1966_v0 }
 0x304   :  { %1541 = vmatpush3.msra.mxu1 %v691_v42  ;;  %v979_v42 = vld [vmem:[#allocation16 + $0x68] sm:$0xff] }
 0x305   :  { %1542 = vmatprep.subr.mxu1 %v1966_v0 }
 0x306   :  { %1543 = vmatpush3.msra.mxu1 %v690_v43  ;;  %v978_v43 = vld [vmem:[#allocation16 + $0x60] sm:$0xff] }
 0x307   :  { %1544 = vmatprep.subr.mxu1 %v1966_v0 }
 0x308   :  { %1545 = vmatpush3.msra.mxu1 %v689_v44  ;;  %v977_v44 = vld [vmem:[#allocation16 + $0x58] sm:$0xff] }
 0x309   :  { %1546 = vmatprep.subr.mxu1 %v1966_v0 }
 0x30a   :  { %1547 = vmatpush3.msra.mxu1 %v688_v45  ;;  %v976_v45 = vld [vmem:[#allocation16 + $0x50] sm:$0xff] }
 0x30b   :  { %1548 = vmatprep.subr.mxu1 %v1966_v0 }
 0x30c   :  { %1549 = vmatpush3.msra.mxu1 %v687_v46  ;;  %v975_v46 = vld [vmem:[#allocation16 + $0x48] sm:$0xff] }
 0x30d   :  { %1550 = vmatprep.subr.mxu1 %v1966_v0 }
 0x30e   :  { %1551 = vmatpush3.msra.mxu1 %v686_v47  ;;  %v974_v47 = vld [vmem:[#allocation16 + $0x40] sm:$0xff] }
 0x30f   :  { %1552 = vmatprep.subr.mxu1 %v1966_v0 }
 0x310   :  { %1553 = vmatpush3.msra.mxu1 %v685_v48  ;;  %v973_v48 = vld [vmem:[#allocation16 + $0x38] sm:$0xff] }
 0x311   :  { %1554 = vmatprep.subr.mxu1 %v1966_v0 }
 0x312   :  { %1555 = vmatpush3.msra.mxu1 %v684_v55 }
 0x313   :  { %1556 = vmatprep.subr.mxu1 %v1966_v0 }
 0x314   :  { %1557 = vmatpush3.msra.mxu1 %v683_v56 }
 0x315   :  { %1558 = vmatprep.subr.mxu1 %v1966_v0 }
 0x316   :  { %1559 = vmatpush3.msra.mxu1 %v682_v57 }
 0x317   :  { %1560 = vmatprep.subr.mxu1 %v1966_v0 }
 0x318   :  { %1561 = vmatpush3.msra.mxu1 %v681_v58  ;;  %v969_v58 = vld [vmem:[#allocation16 + $0x18] sm:$0xff] }
 0x319   :  { %1600 = vmatprep.subr.mxu1 %v1966_v0 }
 0x3b9   :  { %v580_v50 = vpop.f32.mrf.mxu1 }
 0x3ba   :  { %v581_v51 = vadd.f32 %v1178_v49, %v580_v50  ;;  %v972_v49 = vld [vmem:[#allocation16 + $0x30] sm:$0xff]  ;;  %v971_v50 = vld [vmem:[#allocation16 + $0x28] sm:$0xff] }
 0x3bb   :  { %v1494_v52 = vpop.f32.mrf.mxu1 }
 0x3bc   :  { %v584_v53 = vmul.f32 0.2, %v581_v51  ;;  %v1181_v52 = vld [vmem:[%s2372_s17] ss:$0 sm:$0xff] }
 0x3be   :  { %v585_v54 = vmax.f32 %v581_v51, %v584_v53  ;;  %v970_v51 = vld [vmem:[#allocation16 + $0x20] sm:$0xff] }
 0x3c0   :  { %1528 = vmatmul.mubr.f32.vlgmr.msra.gmra.mxu0 %v585_v54 }
 0x3c1   :  { %1597 = vmatprep.mubr.msk.f32.mxu0 %vm1967_vm0, %v1966_v0  ;;  %1566 = vmatpush3.msra.mxu0 %v791_v59  ;;  %v968_v59 = vld [vmem:[#allocation16 + $0x10] sm:$0xff] }
 0x3c2   :  { %1567 = vmatprep.subr.mxu0 %v1966_v0 }
 0x3c3   :  { %1568 = vmatpush3.msra.mxu0 %v790_v60  ;;  %v967_v60 = vld [vmem:[#allocation16 + $0x8] sm:$0xff] }
 0x3c4   :  { %1569 = vmatprep.subr.mxu0 %v1966_v0 }
 0x3c5   :  { %1570 = vmatpush3.msra.mxu0 %v789_v61  ;;  %v966_v61 = vld [vmem:[#allocation16] sm:$0xff] }
 0x3c6   :  { %1571 = vmatprep.subr.mxu0 %v1966_v0 }
 0x3c7   :  { %1572 = vmatpush3.msra.mxu0 %v788_v62  ;;  %v1076_v62 = vld [vmem:[#allocation17 + $0x78] sm:$0xff] }
 0x3c8   :  { %1573 = vmatprep.subr.mxu0 %v1966_v0 }
 0x3c9   :  { %1574 = vmatpush3.msra.mxu0 %v787_v63  ;;  %v1075_v63 = vld [vmem:[#allocation17 + $0x70] sm:$0xff] }
 0x3ca   :  { %1575 = vmatprep.subr.mxu0 %v1966_v0 }
 0x3cb   :  { %1576 = vmatpush3.msra.mxu0 %v786_v1  ;;  %v1074_v1 = vld [vmem:[#allocation17 + $0x68] sm:$0xff] }
 0x3cc   :  { %1577 = vmatprep.subr.mxu0 %v1966_v0 }
 0x3cd   :  { %1578 = vmatpush3.msra.mxu0 %v785_v2  ;;  %v1073_v2 = vld [vmem:[#allocation17 + $0x60] sm:$0xff] }
 0x3ce   :  { %1579 = vmatprep.subr.mxu0 %v1966_v0 }
 0x3cf   :  { %1580 = vmatpush3.msra.mxu0 %v784_v3  ;;  %v1072_v3 = vld [vmem:[#allocation17 + $0x58] sm:$0xff] }
 0x3d0   :  { %1581 = vmatprep.subr.mxu0 %v1966_v0 }
 0x3d1   :  { %1582 = vmatpush3.msra.mxu0 %v783_v4  ;;  %v1071_v4 = vld [vmem:[#allocation17 + $0x50] sm:$0xff] }
 0x3d2   :  { %1583 = vmatprep.subr.mxu0 %v1966_v0 }
 0x3d3   :  { %1584 = vmatpush3.msra.mxu0 %v782_v5  ;;  %v1070_v5 = vld [vmem:[#allocation17 + $0x48] sm:$0xff] }
 0x3d4   :  { %1585 = vmatprep.subr.mxu0 %v1966_v0 }
 0x3d5   :  { %1586 = vmatpush3.msra.mxu0 %v781_v6  ;;  %v1069_v6 = vld [vmem:[#allocation17 + $0x40] sm:$0xff] }
 0x3d6   :  { %1587 = vmatprep.subr.mxu0 %v1966_v0 }
 0x3d7   :  { %1588 = vmatpush3.msra.mxu0 %v780_v7  ;;  %v1068_v7 = vld [vmem:[#allocation17 + $0x38] sm:$0xff] }
 0x3d8   :  { %1589 = vmatprep.subr.mxu0 %v1966_v0 }
 0x3d9   :  { %1590 = vmatpush3.msra.mxu0 %v779_v14 }
 0x3da   :  { %1591 = vmatprep.subr.mxu0 %v1966_v0 }
 0x3db   :  { %1592 = vmatpush3.msra.mxu0 %v778_v15 }
 0x3dc   :  { %1593 = vmatprep.subr.mxu0 %v1966_v0 }
 0x3dd   :  { %1594 = vmatpush3.msra.mxu0 %v777_v16 }
 0x3de   :  { %1595 = vmatprep.subr.mxu0 %v1966_v0 }
 0x3df   :  { %1596 = vmatpush3.msra.mxu0 %v776_v17  ;;  %v1064_v17 = vld [vmem:[#allocation17 + $0x18] sm:$0xff] }
 0x3e0   :  { %1635 = vmatprep.subr.mxu0 %v1966_v0 }
 0x480   :  { %v675_v9 = vpop.f32.mrf.mxu0 }
 0x481   :  { %v676_v10 = vadd.f32 %v1179_v8, %v675_v9  ;;  %v1067_v8 = vld [vmem:[#allocation17 + $0x30] sm:$0xff]  ;;  %v1066_v9 = vld [vmem:[#allocation17 + $0x28] sm:$0xff] }
 0x482   :  { %v1529_v11 = vpop.f32.mrf.mxu0 }
 0x483   :  { %v679_v12 = vmul.f32 0.2, %v676_v10  ;;  %v1182_v11 = vld [vmem:[%s2373_s18] ss:$0 sm:$0xff] }
 0x485   :  { %v680_v13 = vmax.f32 %v676_v10, %v679_v12  ;;  %v1065_v10 = vld [vmem:[#allocation17 + $0x20] sm:$0xff] }
 0x487   :  { %1563 = vmatmul.mubr.f32.vlgmr.msra.gmra.mxu1 %v680_v13 }
 0x488   :  { %1632 = vmatprep.mubr.msk.f32.mxu1 %vm1967_vm0, %v1966_v0  ;;  %1601 = vmatpush3.msra.mxu1 %v886_v18  ;;  %v1063_v18 = vld [vmem:[#allocation17 + $0x10] sm:$0xff] }
 0x489   :  { %1602 = vmatprep.subr.mxu1 %v1966_v0 }
 0x48a   :  { %1603 = vmatpush3.msra.mxu1 %v885_v19  ;;  %v1062_v19 = vld [vmem:[#allocation17 + $0x8] sm:$0xff] }
 0x48b   :  { %1604 = vmatprep.subr.mxu1 %v1966_v0 }
 0x48c   :  { %1605 = vmatpush3.msra.mxu1 %v884_v20  ;;  %v1061_v20 = vld [vmem:[#allocation17] sm:$0xff] }
 0x48d   :  { %1606 = vmatprep.subr.mxu1 %v1966_v0 }
 0x48e   :  { %1607 = vmatpush3.msra.mxu1 %v883_v21  ;;  %v1183_v21 = vld [vmem:[%s2374_s19] ss:$0 sm:$0xff] }
 0x48f   :  { %1608 = vmatprep.subr.mxu1 %v1966_v0 }
 0x490   :  { %1609 = vmatpush3.msra.mxu1 %v882_v22 }
 0x491   :  { %1610 = vmatprep.subr.mxu1 %v1966_v0 }
 0x492   :  { %1611 = vmatpush3.msra.mxu1 %v881_v23 }
 0x493   :  { %1612 = vmatprep.subr.mxu1 %v1966_v0 }
 0x494   :  { %1613 = vmatpush3.msra.mxu1 %v880_v24 }
 0x495   :  { %1614 = vmatprep.subr.mxu1 %v1966_v0 }
 0x496   :  { %1615 = vmatpush3.msra.mxu1 %v879_v25 }
 0x497   :  { %1616 = vmatprep.subr.mxu1 %v1966_v0 }
 0x498   :  { %1617 = vmatpush3.msra.mxu1 %v878_v26 }
 0x499   :  { %1618 = vmatprep.subr.mxu1 %v1966_v0 }
 0x49a   :  { %1619 = vmatpush3.msra.mxu1 %v877_v27  ;;  %v1184_v27 = vld [vmem:[%s2375_s20] ss:$0 sm:$0xff] }
 0x49b   :  { %1620 = vmatprep.subr.mxu1 %v1966_v0 }
 0x49c   :  { %1621 = vmatpush3.msra.mxu1 %v876_v28 }
 0x49d   :  { %1622 = vmatprep.subr.mxu1 %v1966_v0 }
 0x49e   :  { %1623 = vmatpush3.msra.mxu1 %v875_v29 }
 0x49f   :  { %1624 = vmatprep.subr.mxu1 %v1966_v0 }
 0x4a0   :  { %1625 = vmatpush3.msra.mxu1 %v874_v36 }
 0x4a1   :  { %1626 = vmatprep.subr.mxu1 %v1966_v0 }
 0x4a2   :  { %1627 = vmatpush3.msra.mxu1 %v873_v37 }
 0x4a3   :  { %1628 = vmatprep.subr.mxu1 %v1966_v0 }
 0x4a4   :  { %1629 = vmatpush3.msra.mxu1 %v872_v38 }
 0x4a5   :  { %1630 = vmatprep.subr.mxu1 %v1966_v0 }
 0x4a6   :  { %1631 = vmatpush3.msra.mxu1 %v871_v39 }
 0x4a7   :  { %1670 = vmatprep.subr.mxu1 %v1966_v0 }
 0x547   :  { %v770_v31 = vpop.f32.mrf.mxu1 }
 0x548   :  { %v771_v32 = vadd.f32 %v1180_v30, %v770_v31 }
 0x549   :  { %v1564_v33 = vpop.f32.mrf.mxu1 }
 0x54a   :  { %v774_v34 = vmul.f32 0.2, %v771_v32 }
 0x54c   :  { %v775_v35 = vmax.f32 %v771_v32, %v774_v34 }
 0x54e   :  { %1598 = vmatmul.mubr.f32.vlgmr.msra.gmra.mxu0 %v775_v35 }
 0x54f   :  { %1667 = vmatprep.mubr.msk.f32.mxu0 %vm1967_vm0, %v1966_v0  ;;  %1636 = vmatpush3.msra.mxu0 %v981_v40 }
 0x550   :  { %1637 = vmatprep.subr.mxu0 %v1966_v0 }
 0x551   :  { %1638 = vmatpush3.msra.mxu0 %v980_v41 }
 0x552   :  { %1639 = vmatprep.subr.mxu0 %v1966_v0 }
 0x553   :  { %1640 = vmatpush3.msra.mxu0 %v979_v42 }
 0x554   :  { %1641 = vmatprep.subr.mxu0 %v1966_v0 }
 0x555   :  { %1642 = vmatpush3.msra.mxu0 %v978_v43 }
 0x556   :  { %1643 = vmatprep.subr.mxu0 %v1966_v0 }
 0x557   :  { %1644 = vmatpush3.msra.mxu0 %v977_v44 }
 0x558   :  { %1645 = vmatprep.subr.mxu0 %v1966_v0 }
 0x559   :  { %1646 = vmatpush3.msra.mxu0 %v976_v45 }
 0x55a   :  { %1647 = vmatprep.subr.mxu0 %v1966_v0 }
 0x55b   :  { %1648 = vmatpush3.msra.mxu0 %v975_v46 }
 0x55c   :  { %1649 = vmatprep.subr.mxu0 %v1966_v0 }
 0x55d   :  { %1650 = vmatpush3.msra.mxu0 %v974_v47 }
 0x55e   :  { %1651 = vmatprep.subr.mxu0 %v1966_v0 }
 0x55f   :  { %1652 = vmatpush3.msra.mxu0 %v973_v48 }
 0x560   :  { %1653 = vmatprep.subr.mxu0 %v1966_v0 }
 0x561   :  { %1654 = vmatpush3.msra.mxu0 %v972_v49 }
 0x562   :  { %1655 = vmatprep.subr.mxu0 %v1966_v0 }
 0x563   :  { %1656 = vmatpush3.msra.mxu0 %v971_v50 }
 0x564   :  { %1657 = vmatprep.subr.mxu0 %v1966_v0 }
 0x565   :  { %1658 = vmatpush3.msra.mxu0 %v970_v51 }
 0x566   :  { %1659 = vmatprep.subr.mxu0 %v1966_v0 }
 0x567   :  { %1660 = vmatpush3.msra.mxu0 %v969_v58 }
 0x568   :  { %1661 = vmatprep.subr.mxu0 %v1966_v0 }
 0x569   :  { %1662 = vmatpush3.msra.mxu0 %v968_v59 }
 0x56a   :  { %1663 = vmatprep.subr.mxu0 %v1966_v0 }
 0x56b   :  { %1664 = vmatpush3.msra.mxu0 %v967_v60 }
 0x56c   :  { %1665 = vmatprep.subr.mxu0 %v1966_v0 }
 0x56d   :  { %1666 = vmatpush3.msra.mxu0 %v966_v61 }
 0x60e   :  { %v865_v53 = vpop.f32.mrf.mxu0 }
 0x60f   :  { %v866_v54 = vadd.f32 %v1181_v52, %v865_v53 }
 0x610   :  { %v1599_v55 = vpop.f32.mrf.mxu0 }
 0x611   :  { %v869_v56 = vmul.f32 0.2, %v866_v54 }
 0x613   :  { %v870_v57 = vmax.f32 %v866_v54, %v869_v56 }
 0x615   :  { %1633 = vmatmul.mubr.f32.vlgmr.msra.gmra.mxu1 %v870_v57 }
 0x616   :  { %1702 = vmatprep.mubr.msk.f32.mxu1 %vm1967_vm0, %v1966_v0  ;;  %1671 = vmatpush3.msra.mxu1 %v1076_v62 }
 0x617   :  { %1672 = vmatprep.subr.mxu1 %v1966_v0 }
 0x618   :  { %1673 = vmatpush3.msra.mxu1 %v1075_v63 }
 0x619   :  { %1674 = vmatprep.subr.mxu1 %v1966_v0 }
 0x61a   :  { %1675 = vmatpush3.msra.mxu1 %v1074_v1 }
 0x61b   :  { %1676 = vmatprep.subr.mxu1 %v1966_v0 }
 0x61c   :  { %1677 = vmatpush3.msra.mxu1 %v1073_v2 }
 0x61d   :  { %1678 = vmatprep.subr.mxu1 %v1966_v0 }
 0x61e   :  { %1679 = vmatpush3.msra.mxu1 %v1072_v3 }
 0x61f   :  { %1680 = vmatprep.subr.mxu1 %v1966_v0 }
 0x620   :  { %1681 = vmatpush3.msra.mxu1 %v1071_v4 }
 0x621   :  { %1682 = vmatprep.subr.mxu1 %v1966_v0 }
 0x622   :  { %1683 = vmatpush3.msra.mxu1 %v1070_v5 }
 0x623   :  { %1684 = vmatprep.subr.mxu1 %v1966_v0 }
 0x624   :  { %1685 = vmatpush3.msra.mxu1 %v1069_v6 }
 0x625   :  { %1686 = vmatprep.subr.mxu1 %v1966_v0 }
 0x626   :  { %1687 = vmatpush3.msra.mxu1 %v1068_v7 }
 0x627   :  { %1688 = vmatprep.subr.mxu1 %v1966_v0 }
 0x628   :  { %1689 = vmatpush3.msra.mxu1 %v1067_v8 }
 0x629   :  { %1690 = vmatprep.subr.mxu1 %v1966_v0 }
 0x62a   :  { %1691 = vmatpush3.msra.mxu1 %v1066_v9 }
 0x62b   :  { %1692 = vmatprep.subr.mxu1 %v1966_v0 }
 0x62c   :  { %1693 = vmatpush3.msra.mxu1 %v1065_v10 }
 0x62d   :  { %1694 = vmatprep.subr.mxu1 %v1966_v0 }
 0x62e   :  { %1695 = vmatpush3.msra.mxu1 %v1064_v17 }
 0x62f   :  { %1696 = vmatprep.subr.mxu1 %v1966_v0 }
 0x630   :  { %1697 = vmatpush3.msra.mxu1 %v1063_v18 }
 0x631   :  { %1698 = vmatprep.subr.mxu1 %v1966_v0 }
 0x632   :  { %1699 = vmatpush3.msra.mxu1 %v1062_v19 }
 0x633   :  { %1700 = vmatprep.subr.mxu1 %v1966_v0 }
 0x634   :  { %1701 = vmatpush3.msra.mxu1 %v1061_v20 }
 0x6d5   :  { %v960_v12 = vpop.f32.mrf.mxu1 }
 0x6d6   :  { %v961_v13 = vadd.f32 %v1182_v11, %v960_v12 }
 0x6d7   :  { %v1634_v14 = vpop.f32.mrf.mxu1 }
 0x6d8   :  { %v964_v15 = vmul.f32 0.2, %v961_v13 }
 0x6da   :  { %v965_v16 = vmax.f32 %v961_v13, %v964_v15 }
 0x6dc   :  { %1668 = vmatmul.mubr.f32.vlgmr.msra.gmra.mxu0 %v965_v16 }
 0x79c   :  { %v1055_v22 = vpop.f32.mrf.mxu0 }
 0x79d   :  { %v1056_v23 = vadd.f32 %v1183_v21, %v1055_v22 }
 0x79e   :  { %v1669_v24 = vpop.f32.mrf.mxu0 }
 0x79f   :  { %v1059_v25 = vmul.f32 0.2, %v1056_v23 }
 0x7a1   :  { %v1060_v26 = vmax.f32 %v1056_v23, %v1059_v25 }
 0x7a3   :  { %1703 = vmatmul.mubr.f32.vlgmr.msra.gmra.mxu1 %v1060_v26 }
 0x863   :  { %v1150_v28 = vpop.f32.mrf.mxu1 }
 0x864   :  { %v1151_v0 = vadd.f32 %v1184_v27, %v1150_v28 }
 0x865   :  { %v1704_v29 = vpop.f32.mrf.mxu1 }
 0x866   :  { %1154 = vst [vmem:[#allocation19] sm:$0xff] %v1151_v0 }
 0x867   :  { %1931 = shalt.err (!%p1928_p12)
}
 0x868   :  { %1164 = dma.vmem_to_hbm [thread:$0]  %s1162_s5, 128, %s2376_s21, [#allocation4]  }
 0x869   :  { %1952 = dma.done.wait [#allocation4], 128  }
 0x86a   :  { %1953 = vsyncadd [#allocation4], 4294967168 }
 0x86b   :  { %1168 = vsyncpa [#allocation3], 1 }
 0x86c   :  { %1169 = vsyncpa [#allocation6], 1 }
 0x86d   :  { %1170 = vsyncpa [#allocation9], 1 }
 0x86e   :  { %1171 = vsyncpa [#allocation12], 1 }
 0x86f   :  { %1172 = vsyncpa [#allocation15], 1 }
 0x870   :  { %1173 = vsyncpa [#allocation18], 1 }
 0x871   :  { %1174 = vsyncpa [#allocation4], 1 }

// kernel: apply.1
= control target key start
LH: loop header
LB: loop body
LE: loop exit
PB: predicated region body
PF: predicated region fallthrough
CT: control target
= control target key end

     0   :  { %s2355_s0 = inlined_call_operand.vmem [shape: f32[8,128], index: 0, kind: input, shape index: {}]   ;;  %s2356_s1 = inlined_call_operand.hbm [shape: f32[128,128], index: 1, kind: input, shape index: {}]   ;;  %s2357_s2 = inlined_call_operand.hbm [shape: f32[128,128], index: 2, kind: input, shape index: {}]   ;;  %s2358_s3 = inlined_call_operand.hbm [shape: f32[128,128], index: 3, kind: input, shape index: {}]   ;;  %s2359_s4 = inlined_call_operand.hbm [shape: f32[128,128], index: 4, kind: input, shape index: {}]   ;;  %s2360_s5 = inlined_call_operand.hbm [shape: f32[128,128], index: 5, kind: input, shape index: {}]   ;;  %s2361_s6 = inlined_call_operand.hbm [shape: f32[128,128], index: 6, kind: input, shape index: {}]   ;;  %s2362_s7 = inlined_call_operand.hbm [shape: f32[128,128], index: 7, kind: input, shape index: {}]   ;;  %s2363_s8 = inlined_call_operand.hbm [shape: f32[128,128], index: 8, kind: input, shape index: {}]   ;;  %s2364_s9 = inlined_call_operand.hbm [shape: f32[128,128], index: 9, kind: input, shape index: {}]   ;;  %s2365_s10 = inlined_call_operand.hbm [shape: f32[128,128], index: 10, kind: input, shape index: {}]   ;;  %s2366_s11 = inlined_call_operand.vmem [shape: f32[1,128], index: 11, kind: input, shape index: {}]   ;;  %s2367_s12 = inlined_call_operand.vmem [shape: f32[1,128], index: 12, kind: input, shape index: {}]   ;;  %s2368_s13 = inlined_call_operand.vmem [shape: f32[1,128], index: 13, kind: input, shape index: {}]   ;;  %s2369_s14 = inlined_call_operand.vmem [shape: f32[1,128], index: 14, kind: input, shape index: {}]   ;;  %s2370_s15 = inlined_call_operand.vmem [shape: f32[1,128], index: 15, kind: input, shape index: {}]   ;;  %s2371_s16 = inlined_call_operand.vmem [shape: f32[1,128], index: 16, kind: input, shape index: {}]   ;;  %s2372_s17 = inlined_call_operand.vmem [shape: f32[1,128], index: 17, kind: input, shape index: {}]   ;;  %s2373_s18 = inlined_call_operand.vmem [shape: f32[1,128], index: 18, kind: input, shape index: {}]   ;;  %s2374_s19 = inlined_call_operand.vmem [shape: f32[1,128], index: 19, kind: input, shape index: {}]   ;;  %s2375_s20 = inlined_call_operand.vmem [shape: f32[1,128], index: 20, kind: input, shape index: {}]   ;;  %s2376_s21 = inlined_call_operand.hbm [shape: f32[8,128], index: 21, kind: output, shape index: {}]  }
   0x1   :  { %2377 = sst [smem:[#allocation27_spill]] %s2355_s0 }
   0x2   :  { %2378 = sst [smem:[#allocation28_spill]] %s2356_s1 }
   0x3   :  { %2379 = sst [smem:[#allocation29_spill]] %s2357_s2 }
   0x4   :  { %2380 = sst [smem:[#allocation30_spill]] %s2358_s3 }
   0x5   :  { %2381 = sst [smem:[#allocation31_spill]] %s2359_s4 }
   0x6   :  { %2382 = sst [smem:[#allocation32_spill]] %s2360_s5 }
   0x7   :  { %26 = vsyncpa [#allocation3], 0 }
   0x8   :  { %27 = vsyncpa [#allocation6], 0 }
   0x9   :  { %28 = vsyncpa [#allocation9], 0 }
   0xa   :  { %29 = vsyncpa [#allocation12], 0 }
   0xb   :  { %30 = vsyncpa [#allocation15], 0 }
   0xc   :  { %31 = vsyncpa [#allocation18], 0 }
   0xd   :  { %32 = vsyncpa [#allocation4], 0  ;;  %s1954_s2 = smov [#allocation5]   ;;  %s1955_s26 = smov [#allocation8]  }
   0xe   :  { %s52_s25 = sshll.u32 %s1954_s2, 4  ;;  %s76_s27 = sshll.u32 %s1955_s26, 4  ;;  %s53_s25 = int_to_ptr.vmem [resolvable:$true] %s52_s25  ;;  %s77_s27 = int_to_ptr.vmem [resolvable:$true] %s76_s27 }
   0xf   :  { %s1728_s3 = scalar_lea.vmem %s53_s25, 2048  ;;  %p1733_p1 = scmp.lt.s32.totalorder %s53_s25, %s53_s25 }
  0x10   :  { %p1729_p0 = scmp.ne.s32.totalorder %s53_s25, %s1728_s3  ;;  %p1734_p2 = scmp.lt.s32.totalorder %s1728_s3, %s1728_s3 }
  0x12   :  { %p1735_p3 = por %p1734_p2, %p1733_p1 }
  0x14   :  { %p1736_p4 = pnand %p1735_p3, %p1729_p0 }
  0x16   :  { %1739 = shalt.err (!%p1736_p4)
}
  0x17   :  { %s1956_s28 = smov 128   ;;  %s1957_s29 = smov 8  }
  0x18   :  { %s2383_s30 = sld [smem:[#allocation29_spill]]  ;;  %s1748_s5 = scalar_lea.vmem %s77_s27, 2048 }
  0x19   :  { %p1749_p5 = scmp.ne.s32.totalorder %s77_s27, %s1748_s5  ;;  %p1753_p6 = scmp.lt.s32.totalorder %s77_s27, %s77_s27 }
  0x1a   :  { %p1754_p7 = scmp.lt.s32.totalorder %s1748_s5, %s1748_s5 }
  0x1c   :  { %p1755_p8 = por %p1754_p7, %p1753_p6 }
  0x1e   :  { %58 = dma.hbm_to_vmem [thread:$0]  %s2383_s30, 2048, %s53_s25, [#allocation6], %s1956_s28, %s1956_s28, %s1957_s29  }
  0x1f   :  { %p1756_p9 = pnand %p1755_p8, %p1749_p5 }
  0x21   :  { %1759 = shalt.err (!%p1756_p9)
}
  0x22   :  { %s2384_s1 = sld [smem:[#allocation31_spill]]  ;;  %s1958_s24 = smov [#allocation11]  }
  0x23   :  { %s100_s2 = sshll.u32 %s1958_s24, 4  ;;  %s1959_s26 = smov [#allocation14]   ;;  %s101_s2 = int_to_ptr.vmem [resolvable:$true] %s100_s2 }
  0x24   :  { %s124_s3 = sshll.u32 %s1959_s26, 4  ;;  %s1768_s25 = scalar_lea.vmem %s101_s2, 2048  ;;  %s125_s3 = int_to_ptr.vmem [resolvable:$true] %s124_s3 }
  0x25   :  { %p1769_p10 = scmp.ne.s32.totalorder %s101_s2, %s1768_s25  ;;  %p1773_p11 = scmp.lt.s32.totalorder %s101_s2, %s101_s2 }
  0x26   :  { %p1774_p12 = scmp.lt.s32.totalorder %s1768_s25, %s1768_s25 }
  0x28   :  { %82 = dma.hbm_to_vmem [thread:$0]  %s2384_s1, 2048, %s77_s27, [#allocation9], %s1956_s28, %s1956_s28, %s1957_s29  }
  0x29   :  { %p1775_p13 = por %p1774_p12, %p1773_p11 }
  0x2b   :  { %p1776_p0 = pnand %p1775_p13, %p1769_p10 }
  0x2d   :  { %1779 = shalt.err (!%p1776_p0)
}
  0x2e   :  { %106 = dma.hbm_to_vmem [thread:$0]  %s2361_s6, 2048, %s101_s2, [#allocation12], %s1956_s28, %s1956_s28, %s1957_s29  }
  0x2f   :  { %s1788_s27 = scalar_lea.vmem %s125_s3, 2048  ;;  %p1793_p2 = scmp.lt.s32.totalorder %s125_s3, %s125_s3 }
  0x30   :  { %p1789_p1 = scmp.ne.s32.totalorder %s125_s3, %s1788_s27  ;;  %p1794_p3 = scmp.lt.s32.totalorder %s1788_s27, %s1788_s27 }
  0x32   :  { %p1795_p4 = por %p1794_p3, %p1793_p2 }
  0x34   :  { %p1796_p5 = pnand %p1795_p4, %p1789_p1 }
  0x36   :  { %1799 = shalt.err (!%p1796_p5)
}
  0x37   :  { %130 = dma.hbm_to_vmem [thread:$0]  %s2363_s8, 2048, %s125_s3, [#allocation15], %s1956_s28, %s1956_s28, %s1957_s29  }
  0x38   :  { %s1960_s22 = smov [#allocation2]   ;;  %s1961_s1 = smov [#allocation7]  }
  0x39   :  { %s40_s23 = sshll.u32 %s1960_s22, 4  ;;  %s64_s24 = sshll.u32 %s1961_s1, 4  ;;  %s41_s23 = int_to_ptr.vmem [resolvable:$true] %s40_s23  ;;  %s65_s24 = int_to_ptr.vmem [resolvable:$true] %s64_s24 }
  0x3a   :  { %s1808_s6 = scalar_lea.vmem %s41_s23, 2048  ;;  %p1813_p7 = scmp.lt.s32.totalorder %s41_s23, %s41_s23 }
  0x3b   :  { %p1809_p6 = scmp.ne.s32.totalorder %s41_s23, %s1808_s6  ;;  %p1814_p8 = scmp.lt.s32.totalorder %s1808_s6, %s1808_s6 }
  0x3d   :  { %p1815_p9 = por %p1814_p8, %p1813_p7 }
  0x3f   :  { %p1816_p10 = pnand %p1815_p9, %p1809_p6 }
  0x41   :  { %1819 = shalt.err (!%p1816_p10)
}
  0x42   :  { %s2385_s25 = sld [smem:[#allocation28_spill]]  ;;  %s1828_s8 = scalar_lea.vmem %s65_s24, 2048 }
  0x43   :  { %p1829_p11 = scmp.ne.s32.totalorder %s65_s24, %s1828_s8  ;;  %p1833_p12 = scmp.lt.s32.totalorder %s65_s24, %s65_s24 }
  0x44   :  { %p1834_p13 = scmp.lt.s32.totalorder %s1828_s8, %s1828_s8 }
  0x46   :  { %p1835_p0 = por %p1834_p13, %p1833_p12 }
  0x48   :  { %46 = dma.hbm_to_vmem [thread:$0]  %s2385_s25, 2048, %s41_s23, [#allocation3], %s1956_s28, %s1956_s28, %s1957_s29  }
  0x49   :  { %p1836_p1 = pnand %p1835_p0, %p1829_p11 }
  0x4b   :  { %1839 = shalt.err (!%p1836_p1)
}
  0x4c   :  { %s2386_s4 = sld [smem:[#allocation30_spill]]  ;;  %s1962_s27 = smov [#allocation10]  }
  0x4d   :  { %s88_s30 = sshll.u32 %s1962_s27, 4  ;;  %s1963_s5 = smov [#allocation13]   ;;  %s89_s30 = int_to_ptr.vmem [resolvable:$true] %s88_s30 }
  0x4e   :  { %s112_s22 = sshll.u32 %s1963_s5, 4  ;;  %s1848_s23 = scalar_lea.vmem %s89_s30, 2048  ;;  %s113_s22 = int_to_ptr.vmem [resolvable:$true] %s112_s22 }
  0x4f   :  { %p1849_p2 = scmp.ne.s32.totalorder %s89_s30, %s1848_s23  ;;  %p1853_p3 = scmp.lt.s32.totalorder %s89_s30, %s89_s30 }
  0x50   :  { %p1854_p4 = scmp.lt.s32.totalorder %s1848_s23, %s1848_s23 }
  0x52   :  { %70 = dma.hbm_to_vmem [thread:$0]  %s2386_s4, 2048, %s65_s24, [#allocation6], %s1956_s28, %s1956_s28, %s1957_s29  }
  0x53   :  { %p1855_p5 = por %p1854_p4, %p1853_p3 }
  0x55   :  { %p1856_p6 = pnand %p1855_p5, %p1849_p2 }
  0x57   :  { %1859 = shalt.err (!%p1856_p6)
}
  0x58   :  { %s2387_s2 = sld [smem:[#allocation32_spill]]  ;;  %s1868_s24 = scalar_lea.vmem %s113_s22, 2048 }
  0x59   :  { %p1869_p7 = scmp.ne.s32.totalorder %s113_s22, %s1868_s24  ;;  %p1873_p8 = scmp.lt.s32.totalorder %s113_s22, %s113_s22 }
  0x5a   :  { %p1874_p9 = scmp.lt.s32.totalorder %s1868_s24, %s1868_s24 }
  0x5c   :  { %p1875_p10 = por %p1874_p9, %p1873_p8 }
  0x5e   :  { %94 = dma.hbm_to_vmem [thread:$0]  %s2387_s2, 2048, %s89_s30, [#allocation9], %s1956_s28, %s1956_s28, %s1957_s29  }
  0x5f   :  { %p1876_p11 = pnand %p1875_p10, %p1869_p7 }
  0x61   :  { %1879 = shalt.err (!%p1876_p11)
}
  0x62   :  { %118 = dma.hbm_to_vmem [thread:$0]  %s2362_s7, 2048, %s113_s22, [#allocation12], %s1956_s28, %s1956_s28, %s1957_s29  }
  0x63   :  { %s1964_s8 = smov [#allocation16]   ;;  %s1965_s0 = smov [#allocation17]  }
  0x64   :  { %s136_s3 = sshll.u32 %s1964_s8, 4  ;;  %s148_s4 = sshll.u32 %s1965_s0, 4  ;;  %s137_s3 = int_to_ptr.vmem [resolvable:$true] %s136_s3  ;;  %s149_s4 = int_to_ptr.vmem [resolvable:$true] %s148_s4 }
  0x65   :  { %s1888_s27 = scalar_lea.vmem %s137_s3, 2048  ;;  %p1893_p13 = scmp.lt.s32.totalorder %s137_s3, %s137_s3 }
  0x66   :  { %p1889_p12 = scmp.ne.s32.totalorder %s137_s3, %s1888_s27  ;;  %p1894_p0 = scmp.lt.s32.totalorder %s1888_s27, %s1888_s27 }
  0x68   :  { %p1895_p1 = por %p1894_p0, %p1893_p13 }
  0x6a   :  { %p1896_p2 = pnand %p1895_p1, %p1889_p12 }
  0x6c   :  { %1899 = shalt.err (!%p1896_p2)
}
  0x6d   :  { %142 = dma.hbm_to_vmem [thread:$0]  %s2364_s9, 2048, %s137_s3, [#allocation15], %s1956_s28, %s1956_s28, %s1957_s29  }
  0x6e   :  { %s1908_s7 = scalar_lea.vmem %s149_s4, 2048  ;;  %p1913_p4 = scmp.lt.s32.totalorder %s149_s4, %s149_s4 }
  0x6f   :  { %p1909_p3 = scmp.ne.s32.totalorder %s149_s4, %s1908_s7  ;;  %p1914_p5 = scmp.lt.s32.totalorder %s1908_s7, %s1908_s7 }
  0x71   :  { %p1915_p6 = por %p1914_p5, %p1913_p4 }
  0x73   :  { %p1916_p7 = pnand %p1915_p6, %p1909_p3 }
  0x75   :  { %1919 = shalt.err (!%p1916_p7)
}
  0x76   :  { %154 = dma.hbm_to_vmem [thread:$0]  %s2365_s10, 2048, %s149_s4, [#allocation18], %s1956_s28, %s1956_s28, %s1957_s29  }
  0x77   :  { %1940 = dma.done.wait [#allocation3], 2048  }
  0x78   :  { %1941 = vsyncadd [#allocation3], 4294965248 }
  0x79   :  { %1942 = dma.done.wait [#allocation6], 4096  }
  0x7a   :  { %1943 = vsyncadd [#allocation6], 4294963200 }
  0x7b   :  { %1944 = dma.done.wait [#allocation9], 4096  }
  0x7c   :  { %1945 = vsyncadd [#allocation9], 4294963200 }
  0x7d   :  { %1946 = dma.done.wait [#allocation12], 4096  }
  0x7e   :  { %1947 = vsyncadd [#allocation12], 4294963200 }
  0x7f   :  { %1948 = dma.done.wait [#allocation15], 4096  }
  0x80   :  { %1949 = vsyncadd [#allocation15], 4294963200 }
  0x81   :  { %1950 = dma.done.wait [#allocation18], 2048  }
  0x82   :  { %1951 = vsyncadd [#allocation18], 4294965248  ;;  %v1966_v0 = vmov 0.0   ;;  %vm1967_vm0 = vmmov 0   ;;  %v221_v1 = vld [vmem:[#allocation2 + $0x78] sm:$0xff]  ;;  %v220_v2 = vld [vmem:[#allocation2 + $0x70] sm:$0xff] }
  0x83   :  { %1355 = vmatprep.subr.mxu0 %v1966_v0  ;;  %1387 = vmatprep.mubr.msk.f32.mxu0 %vm1967_vm0, %v1966_v0  ;;  %v219_v3 = vld [vmem:[#allocation2 + $0x68] sm:$0xff]  ;;  %v218_v4 = vld [vmem:[#allocation2 + $0x60] sm:$0xff]  ;;  %v316_v5 = vld [vmem:[#allocation5 + $0x78] sm:$0xff]  ;;  %s2388_s28 = sld [smem:[#allocation27_spill]]  ;;  %s1968_s30 = smov [#allocation19]  }
  0x84   :  { %1390 = vmatprep.subr.mxu1 %v1966_v0  ;;  %1422 = vmatprep.mubr.msk.f32.mxu1 %vm1967_vm0, %v1966_v0  ;;  %v217_v6 = vld [vmem:[#allocation2 + $0x58] sm:$0xff]  ;;  %v315_v7 = vld [vmem:[#allocation5 + $0x70] sm:$0xff]  ;;  %v314_v8 = vld [vmem:[#allocation5 + $0x68] sm:$0xff]  ;;  %s1161_s5 = sshll.u32 %s1968_s30, 4  ;;  %s1162_s5 = int_to_ptr.vmem [resolvable:$true] %s1161_s5 }
  0x85   :  { %1356 = vmatpush3.msra.mxu0 %v221_v1  ;;  %1391 = vmatpush3.msra.mxu1 %v316_v5  ;;  %v216_v9 = vld [vmem:[#allocation2 + $0x50] sm:$0xff]  ;;  %v313_v10 = vld [vmem:[#allocation5 + $0x60] sm:$0xff]  ;;  %v215_v11 = vld [vmem:[#allocation2 + $0x48] sm:$0xff]  ;;  %s1920_s7 = scalar_lea.vmem %s1162_s5, 128  ;;  %p1925_p9 = scmp.lt.s32.totalorder %s1162_s5, %s1162_s5 }
  0x86   :  { %1357 = vmatprep.subr.mxu0 %v1966_v0  ;;  %1392 = vmatprep.subr.mxu1 %v1966_v0  ;;  %v312_v12 = vld [vmem:[#allocation5 + $0x58] sm:$0xff]  ;;  %v214_v13 = vld [vmem:[#allocation2 + $0x40] sm:$0xff]  ;;  %v311_v14 = vld [vmem:[#allocation5 + $0x50] sm:$0xff]  ;;  %p1921_p8 = scmp.ne.s32.totalorder %s1162_s5, %s1920_s7  ;;  %p1926_p10 = scmp.lt.s32.totalorder %s1920_s7, %s1920_s7 }
  0x87   :  { %1358 = vmatpush3.msra.mxu0 %v220_v2  ;;  %1393 = vmatpush3.msra.mxu1 %v315_v7  ;;  %v213_v15 = vld [vmem:[#allocation2 + $0x38] sm:$0xff]  ;;  %v310_v16 = vld [vmem:[#allocation5 + $0x48] sm:$0xff]  ;;  %v212_v17 = vld [vmem:[#allocation2 + $0x30] sm:$0xff] }
  0x88   :  { %1359 = vmatprep.subr.mxu0 %v1966_v0  ;;  %1394 = vmatprep.subr.mxu1 %v1966_v0  ;;  %v309_v18 = vld [vmem:[#allocation5 + $0x40] sm:$0xff]  ;;  %v211_v19 = vld [vmem:[#allocation2 + $0x28] sm:$0xff]  ;;  %v308_v20 = vld [vmem:[#allocation5 + $0x38] sm:$0xff]  ;;  %p1927_p11 = por %p1926_p10, %p1925_p9 }
  0x89   :  { %1360 = vmatpush3.msra.mxu0 %v219_v3  ;;  %1395 = vmatpush3.msra.mxu1 %v314_v8  ;;  %v210_v21 = vld [vmem:[#allocation2 + $0x20] sm:$0xff]  ;;  %v307_v22 = vld [vmem:[#allocation5 + $0x30] sm:$0xff]  ;;  %v209_v23 = vld [vmem:[#allocation2 + $0x18] sm:$0xff] }
  0x8a   :  { %1361 = vmatprep.subr.mxu0 %v1966_v0  ;;  %1396 = vmatprep.subr.mxu1 %v1966_v0  ;;  %v306_v24 = vld [vmem:[#allocation5 + $0x28] sm:$0xff]  ;;  %v208_v25 = vld [vmem:[#allocation2 + $0x10] sm:$0xff]  ;;  %v305_v26 = vld [vmem:[#allocation5 + $0x20] sm:$0xff]  ;;  %p1928_p12 = pnand %p1927_p11, %p1921_p8 }
  0x8b   :  { %1362 = vmatpush3.msra.mxu0 %v218_v4  ;;  %1397 = vmatpush3.msra.mxu1 %v313_v10  ;;  %v207_v27 = vld [vmem:[#allocation2 + $0x8] sm:$0xff]  ;;  %v206_v28 = vld [vmem:[#allocation2] sm:$0xff]  ;;  %v304_v30 = vld [vmem:[#allocation5 + $0x18] sm:$0xff] }
  0x8c   :  { %1363 = vmatprep.subr.mxu0 %v1966_v0  ;;  %1398 = vmatprep.subr.mxu1 %v1966_v0  ;;  %v205_v29 = vld [vmem:[%s2388_s28] sm:$0xff]  ;;  %v303_v31 = vld [vmem:[#allocation5 + $0x10] sm:$0xff]  ;;  %v302_v32 = vld [vmem:[#allocation5 + $0x8] sm:$0xff] }
  0x8d   :  { %1364 = vmatpush3.msra.mxu0 %v217_v6  ;;  %1399 = vmatpush3.msra.mxu1 %v312_v12  ;;  %v301_v33 = vld [vmem:[#allocation5] sm:$0xff]  ;;  %v411_v34 = vld [vmem:[#allocation7 + $0x78] sm:$0xff]  ;;  %v410_v35 = vld [vmem:[#allocation7 + $0x70] sm:$0xff] }
  0x8e   :  { %1365 = vmatprep.subr.mxu0 %v1966_v0  ;;  %1400 = vmatprep.subr.mxu1 %v1966_v0  ;;  %v409_v36 = vld [vmem:[#allocation7 + $0x68] sm:$0xff]  ;;  %v408_v37 = vld [vmem:[#allocation7 + $0x60] sm:$0xff]  ;;  %v407_v38 = vld [vmem:[#allocation7 + $0x58] sm:$0xff] }
  0x8f   :  { %1366 = vmatpush3.msra.mxu0 %v216_v9  ;;  %1401 = vmatpush3.msra.mxu1 %v311_v14  ;;  %v406_v39 = vld [vmem:[#allocation7 + $0x50] sm:$0xff]  ;;  %v405_v40 = vld [vmem:[#allocation7 + $0x48] sm:$0xff]  ;;  %v404_v41 = vld [vmem:[#allocation7 + $0x40] sm:$0xff] }
  0x90   :  { %1367 = vmatprep.subr.mxu0 %v1966_v0  ;;  %1402 = vmatprep.subr.mxu1 %v1966_v0  ;;  %v403_v42 = vld [vmem:[#allocation7 + $0x38] sm:$0xff]  ;;  %v402_v43 = vld [vmem:[#allocation7 + $0x30] sm:$0xff]  ;;  %v401_v44 = vld [vmem:[#allocation7 + $0x28] sm:$0xff] }
  0x91   :  { %1368 = vmatpush3.msra.mxu0 %v215_v11  ;;  %1403 = vmatpush3.msra.mxu1 %v310_v16  ;;  %v400_v45 = vld [vmem:[#allocation7 + $0x20] sm:$0xff]  ;;  %v399_v52 = vld [vmem:[#allocation7 + $0x18] sm:$0xff]  ;;  %v398_v53 = vld [vmem:[#allocation7 + $0x10] sm:$0xff] }
  0x92   :  { %1369 = vmatprep.subr.mxu0 %v1966_v0  ;;  %1404 = vmatprep.subr.mxu1 %v1966_v0  ;;  %v1175_v46 = vld [vmem:[%s2366_s11] ss:$0 sm:$0xff]  ;;  %v397_v54 = vld [vmem:[#allocation7 + $0x8] sm:$0xff]  ;;  %v506_v56 = vld [vmem:[#allocation8 + $0x78] sm:$0xff] }
  0x93   :  { %1370 = vmatpush3.msra.mxu0 %v214_v13  ;;  %1405 = vmatpush3.msra.mxu1 %v309_v18  ;;  %v396_v55 = vld [vmem:[#allocation7] sm:$0xff]  ;;  %v505_v57 = vld [vmem:[#allocation8 + $0x70] sm:$0xff]  ;;  %v504_v58 = vld [vmem:[#allocation8 + $0x68] sm:$0xff] }
  0x94   :  { %1371 = vmatprep.subr.mxu0 %v1966_v0  ;;  %1406 = vmatprep.subr.mxu1 %v1966_v0  ;;  %v503_v59 = vld [vmem:[#allocation8 + $0x60] sm:$0xff]  ;;  %v502_v60 = vld [vmem:[#allocation8 + $0x58] sm:$0xff]  ;;  %v501_v61 = vld [vmem:[#allocation8 + $0x50] sm:$0xff] }
  0x95   :  { %1372 = vmatpush3.msra.mxu0 %v213_v15  ;;  %1407 = vmatpush3.msra.mxu1 %v308_v20  ;;  %v500_v62 = vld [vmem:[#allocation8 + $0x48] sm:$0xff]  ;;  %v499_v63 = vld [vmem:[#allocation8 + $0x40] sm:$0xff]  ;;  %v498_v1 = vld [vmem:[#allocation8 + $0x38] sm:$0xff] }
  0x96   :  { %1373 = vmatprep.subr.mxu0 %v1966_v0  ;;  %1408 = vmatprep.subr.mxu1 %v1966_v0  ;;  %v497_v2 = vld [vmem:[#allocation8 + $0x30] sm:$0xff]  ;;  %v496_v3 = vld [vmem:[#allocation8 + $0x28] sm:$0xff]  ;;  %v495_v4 = vld [vmem:[#allocation8 + $0x20] sm:$0xff] }
  0x97   :  { %1374 = vmatpush3.msra.mxu0 %v212_v17  ;;  %1409 = vmatpush3.msra.mxu1 %v307_v22  ;;  %v1176_v5 = vld [vmem:[%s2367_s12] ss:$0 sm:$0xff]  ;;  %v494_v11 = vld [vmem:[#allocation8 + $0x18] sm:$0xff]  ;;  %v493_v12 = vld [vmem:[#allocation8 + $0x10] sm:$0xff] }
  0x98   :  { %1375 = vmatprep.subr.mxu0 %v1966_v0  ;;  %1410 = vmatprep.subr.mxu1 %v1966_v0  ;;  %v492_v13 = vld [vmem:[#allocation8 + $0x8] sm:$0xff]  ;;  %v491_v14 = vld [vmem:[#allocation8] sm:$0xff]  ;;  %v601_v15 = vld [vmem:[#allocation10 + $0x78] sm:$0xff] }
  0x99   :  { %1376 = vmatpush3.msra.mxu0 %v211_v19  ;;  %1411 = vmatpush3.msra.mxu1 %v306_v24  ;;  %v600_v16 = vld [vmem:[#allocation10 + $0x70] sm:$0xff]  ;;  %v599_v17 = vld [vmem:[#allocation10 + $0x68] sm:$0xff]  ;;  %v598_v18 = vld [vmem:[#allocation10 + $0x60] sm:$0xff] }
  0x9a   :  { %1377 = vmatprep.subr.mxu0 %v1966_v0  ;;  %1412 = vmatprep.subr.mxu1 %v1966_v0  ;;  %v597_v19 = vld [vmem:[#allocation10 + $0x58] sm:$0xff]  ;;  %v596_v20 = vld [vmem:[#allocation10 + $0x50] sm:$0xff]  ;;  %v594_v22 = vld [vmem:[#allocation10 + $0x40] sm:$0xff] }
  0x9b   :  { %1378 = vmatpush3.msra.mxu0 %v210_v21  ;;  %1413 = vmatpush3.msra.mxu1 %v305_v26  ;;  %v595_v21 = vld [vmem:[#allocation10 + $0x48] sm:$0xff]  ;;  %v592_v24 = vld [vmem:[#allocation10 + $0x30] sm:$0xff]  ;;  %v590_v26 = vld [vmem:[#allocation10 + $0x20] sm:$0xff] }
  0x9c   :  { %1379 = vmatprep.subr.mxu0 %v1966_v0  ;;  %1414 = vmatprep.subr.mxu1 %v1966_v0 }
  0x9d   :  { %1380 = vmatpush3.msra.mxu0 %v209_v23  ;;  %1415 = vmatpush3.msra.mxu1 %v304_v30  ;;  %v593_v23 = vld [vmem:[#allocation10 + $0x38] sm:$0xff] }
  0x9e   :  { %1381 = vmatprep.subr.mxu0 %v1966_v0  ;;  %1416 = vmatprep.subr.mxu1 %v1966_v0 }
  0x9f   :  { %1382 = vmatpush3.msra.mxu0 %v208_v25  ;;  %1417 = vmatpush3.msra.mxu1 %v303_v31  ;;  %v591_v25 = vld [vmem:[#allocation10 + $0x28] sm:$0xff] }
  0xa0   :  { %1383 = vmatprep.subr.mxu0 %v1966_v0  ;;  %1418 = vmatprep.subr.mxu1 %v1966_v0 }
  0xa1   :  { %1384 = vmatpush3.msra.mxu0 %v207_v27  ;;  %1419 = vmatpush3.msra.mxu1 %v302_v32  ;;  %v1177_v27 = vld [vmem:[%s2368_s13] ss:$0 sm:$0xff] }
  0xa2   :  { %1385 = vmatprep.subr.mxu0 %v1966_v0  ;;  %1420 = vmatprep.subr.mxu1 %v1966_v0 }
  0xa3   :  { %1386 = vmatpush3.msra.mxu0 %v206_v28  ;;  %1421 = vmatpush3.msra.mxu1 %v301_v33  ;;  %v589_v33 = vld [vmem:[#allocation10 + $0x18] sm:$0xff] }
  0xa4   :  { %1388 = vmatmul.mubr.f32.vlgmr.msra.gmra.mxu0 %v205_v29  ;;  %1425 = vmatprep.subr.mxu0 %v1966_v0 }
  0xa5   :  { %1457 = vmatprep.mubr.msk.f32.mxu0 %vm1967_vm0, %v1966_v0  ;;  %1460 = vmatprep.subr.mxu1 %v1966_v0 }
  0xa6   :  { %1426 = vmatpush3.msra.mxu0 %v411_v34  ;;  %v588_v34 = vld [vmem:[#allocation10 + $0x10] sm:$0xff] }
  0xa7   :  { %1427 = vmatprep.subr.mxu0 %v1966_v0 }
  0xa8   :  { %1428 = vmatpush3.msra.mxu0 %v410_v35  ;;  %v587_v35 = vld [vmem:[#allocation10 + $0x8] sm:$0xff] }
  0xa9   :  { %1429 = vmatprep.subr.mxu0 %v1966_v0 }
  0xaa   :  { %1430 = vmatpush3.msra.mxu0 %v409_v36  ;;  %v586_v36 = vld [vmem:[#allocation10] sm:$0xff] }
  0xab   :  { %1431 = vmatprep.subr.mxu0 %v1966_v0 }
  0xac   :  { %1432 = vmatpush3.msra.mxu0 %v408_v37  ;;  %v696_v37 = vld [vmem:[#allocation11 + $0x78] sm:$0xff] }
  0xad   :  { %1433 = vmatprep.subr.mxu0 %v1966_v0 }
  0xae   :  { %1434 = vmatpush3.msra.mxu0 %v407_v38  ;;  %v695_v38 = vld [vmem:[#allocation11 + $0x70] sm:$0xff] }
  0xaf   :  { %1435 = vmatprep.subr.mxu0 %v1966_v0 }
  0xb0   :  { %1436 = vmatpush3.msra.mxu0 %v406_v39  ;;  %v694_v39 = vld [vmem:[#allocation11 + $0x68] sm:$0xff] }
  0xb1   :  { %1437 = vmatprep.subr.mxu0 %v1966_v0 }
  0xb2   :  { %1438 = vmatpush3.msra.mxu0 %v405_v40  ;;  %v693_v40 = vld [vmem:[#allocation11 + $0x60] sm:$0xff] }
  0xb3   :  { %1439 = vmatprep.subr.mxu0 %v1966_v0 }
  0xb4   :  { %1440 = vmatpush3.msra.mxu0 %v404_v41  ;;  %v692_v41 = vld [vmem:[#allocation11 + $0x58] sm:$0xff] }
  0xb5   :  { %1441 = vmatprep.subr.mxu0 %v1966_v0 }
  0xb6   :  { %1442 = vmatpush3.msra.mxu0 %v403_v42  ;;  %v691_v42 = vld [vmem:[#allocation11 + $0x50] sm:$0xff] }
  0xb7   :  { %1443 = vmatprep.subr.mxu0 %v1966_v0 }
  0xb8   :  { %1444 = vmatpush3.msra.mxu0 %v402_v43  ;;  %v690_v43 = vld [vmem:[#allocation11 + $0x48] sm:$0xff] }
  0xb9   :  { %1445 = vmatprep.subr.mxu0 %v1966_v0 }
  0xba   :  { %1446 = vmatpush3.msra.mxu0 %v401_v44  ;;  %v689_v44 = vld [vmem:[#allocation11 + $0x40] sm:$0xff] }
  0xbb   :  { %1447 = vmatprep.subr.mxu0 %v1966_v0 }
  0xbc   :  { %1448 = vmatpush3.msra.mxu0 %v400_v45  ;;  %v688_v45 = vld [vmem:[#allocation11 + $0x38] sm:$0xff] }
  0xbd   :  { %1449 = vmatprep.subr.mxu0 %v1966_v0 }
  0xbe   :  { %1450 = vmatpush3.msra.mxu0 %v399_v52 }
  0xbf   :  { %1451 = vmatprep.subr.mxu0 %v1966_v0 }
  0xc0   :  { %1452 = vmatpush3.msra.mxu0 %v398_v53 }
  0xc1   :  { %1453 = vmatprep.subr.mxu0 %v1966_v0 }
  0xc2   :  { %1454 = vmatpush3.msra.mxu0 %v397_v54 }
  0xc3   :  { %1455 = vmatprep.subr.mxu0 %v1966_v0 }
  0xc4   :  { %1456 = vmatpush3.msra.mxu0 %v396_v55  ;;  %v684_v55 = vld [vmem:[#allocation11 + $0x18] sm:$0xff] }
  0xc5   :  { %1495 = vmatprep.subr.mxu0 %v1966_v0 }
 0x164   :  { %v295_v47 = vpop.f32.mrf.mxu0 }
 0x165   :  { %v296_v48 = vadd.f32 %v1175_v46, %v295_v47  ;;  %v687_v46 = vld [vmem:[#allocation11 + $0x30] sm:$0xff]  ;;  %v686_v47 = vld [vmem:[#allocation11 + $0x28] sm:$0xff] }
 0x166   :  { %v1389_v49 = vpop.f32.mrf.mxu0 }
 0x167   :  { %v299_v50 = vmul.f32 0.2, %v296_v48  ;;  %v1178_v49 = vld [vmem:[%s2369_s14] ss:$0 sm:$0xff] }
 0x169   :  { %v300_v51 = vmax.f32 %v296_v48, %v299_v50  ;;  %v685_v48 = vld [vmem:[#allocation11 + $0x20] sm:$0xff] }
 0x16b   :  { %1423 = vmatmul.mubr.f32.vlgmr.msra.gmra.mxu1 %v300_v51 }
 0x16c   :  { %1492 = vmatprep.mubr.msk.f32.mxu1 %vm1967_vm0, %v1966_v0  ;;  %1461 = vmatpush3.msra.mxu1 %v506_v56  ;;  %v683_v56 = vld [vmem:[#allocation11 + $0x10] sm:$0xff] }
 0x16d   :  { %1462 = vmatprep.subr.mxu1 %v1966_v0 }
 0x16e   :  { %1463 = vmatpush3.msra.mxu1 %v505_v57  ;;  %v682_v57 = vld [vmem:[#allocation11 + $0x8] sm:$0xff] }
 0x16f   :  { %1464 = vmatprep.subr.mxu1 %v1966_v0 }
 0x170   :  { %1465 = vmatpush3.msra.mxu1 %v504_v58  ;;  %v681_v58 = vld [vmem:[#allocation11] sm:$0xff] }
 0x171   :  { %1466 = vmatprep.subr.mxu1 %v1966_v0 }
 0x172   :  { %1467 = vmatpush3.msra.mxu1 %v503_v59  ;;  %v791_v59 = vld [vmem:[#allocation13 + $0x78] sm:$0xff] }
 0x173   :  { %1468 = vmatprep.subr.mxu1 %v1966_v0 }
 0x174   :  { %1469 = vmatpush3.msra.mxu1 %v502_v60  ;;  %v790_v60 = vld [vmem:[#allocation13 + $0x70] sm:$0xff] }
 0x175   :  { %1470 = vmatprep.subr.mxu1 %v1966_v0 }
 0x176   :  { %1471 = vmatpush3.msra.mxu1 %v501_v61  ;;  %v789_v61 = vld [vmem:[#allocation13 + $0x68] sm:$0xff] }
 0x177   :  { %1472 = vmatprep.subr.mxu1 %v1966_v0 }
 0x178   :  { %1473 = vmatpush3.msra.mxu1 %v500_v62  ;;  %v788_v62 = vld [vmem:[#allocation13 + $0x60] sm:$0xff] }
 0x179   :  { %1474 = vmatprep.subr.mxu1 %v1966_v0 }
 0x17a   :  { %1475 = vmatpush3.msra.mxu1 %v499_v63  ;;  %v787_v63 = vld [vmem:[#allocation13 + $0x58] sm:$0xff] }
 0x17b   :  { %1476 = vmatprep.subr.mxu1 %v1966_v0 }
 0x17c   :  { %1477 = vmatpush3.msra.mxu1 %v498_v1  ;;  %v786_v1 = vld [vmem:[#allocation13 + $0x50] sm:$0xff] }
 0x17d   :  { %1478 = vmatprep.subr.mxu1 %v1966_v0 }
 0x17e   :  { %1479 = vmatpush3.msra.mxu1 %v497_v2  ;;  %v785_v2 = vld [vmem:[#allocation13 + $0x48] sm:$0xff] }
 0x17f   :  { %1480 = vmatprep.subr.mxu1 %v1966_v0 }
 0x180   :  { %1481 = vmatpush3.msra.mxu1 %v496_v3  ;;  %v784_v3 = vld [vmem:[#allocation13 + $0x40] sm:$0xff] }
 0x181   :  { %1482 = vmatprep.subr.mxu1 %v1966_v0 }
 0x182   :  { %1483 = vmatpush3.msra.mxu1 %v495_v4  ;;  %v783_v4 = vld [vmem:[#allocation13 + $0x38] sm:$0xff] }
 0x183   :  { %1484 = vmatprep.subr.mxu1 %v1966_v0 }
 0x184   :  { %1485 = vmatpush3.msra.mxu1 %v494_v11 }
 0x185   :  { %1486 = vmatprep.subr.mxu1 %v1966_v0 }
 0x186   :  { %1487 = vmatpush3.msra.mxu1 %v493_v12 }
 0x187   :  { %1488 = vmatprep.subr.mxu1 %v1966_v0 }
 0x188   :  { %1489 = vmatpush3.msra.mxu1 %v492_v13 }
 0x189   :  { %1490 = vmatprep.subr.mxu1 %v1966_v0 }
 0x18a   :  { %1491 = vmatpush3.msra.mxu1 %v491_v14  ;;  %v779_v14 = vld [vmem:[#allocation13 + $0x18] sm:$0xff] }
 0x18b   :  { %1530 = vmatprep.subr.mxu1 %v1966_v0 }
 0x22b   :  { %v390_v6 = vpop.f32.mrf.mxu1 }
 0x22c   :  { %v391_v7 = vadd.f32 %v1176_v5, %v390_v6  ;;  %v782_v5 = vld [vmem:[#allocation13 + $0x30] sm:$0xff]  ;;  %v781_v6 = vld [vmem:[#allocation13 + $0x28] sm:$0xff] }
 0x22d   :  { %v1424_v8 = vpop.f32.mrf.mxu1 }
 0x22e   :  { %v394_v9 = vmul.f32 0.2, %v391_v7  ;;  %v1179_v8 = vld [vmem:[%s2370_s15] ss:$0 sm:$0xff] }
 0x230   :  { %v395_v10 = vmax.f32 %v391_v7, %v394_v9  ;;  %v780_v7 = vld [vmem:[#allocation13 + $0x20] sm:$0xff] }
 0x232   :  { %1458 = vmatmul.mubr.f32.vlgmr.msra.gmra.mxu0 %v395_v10 }
 0x233   :  { %1527 = vmatprep.mubr.msk.f32.mxu0 %vm1967_vm0, %v1966_v0  ;;  %1496 = vmatpush3.msra.mxu0 %v601_v15  ;;  %v778_v15 = vld [vmem:[#allocation13 + $0x10] sm:$0xff] }
 0x234   :  { %1497 = vmatprep.subr.mxu0 %v1966_v0 }
 0x235   :  { %1498 = vmatpush3.msra.mxu0 %v600_v16  ;;  %v777_v16 = vld [vmem:[#allocation13 + $0x8] sm:$0xff] }
 0x236   :  { %1499 = vmatprep.subr.mxu0 %v1966_v0 }
 0x237   :  { %1500 = vmatpush3.msra.mxu0 %v599_v17  ;;  %v776_v17 = vld [vmem:[#allocation13] sm:$0xff] }
 0x238   :  { %1501 = vmatprep.subr.mxu0 %v1966_v0 }
 0x239   :  { %1502 = vmatpush3.msra.mxu0 %v598_v18  ;;  %v886_v18 = vld [vmem:[#allocation14 + $0x78] sm:$0xff] }
 0x23a   :  { %1503 = vmatprep.subr.mxu0 %v1966_v0 }
 0x23b   :  { %1504 = vmatpush3.msra.mxu0 %v597_v19  ;;  %v885_v19 = vld [vmem:[#allocation14 + $0x70] sm:$0xff] }
 0x23c   :  { %1505 = vmatprep.subr.mxu0 %v1966_v0 }
 0x23d   :  { %1506 = vmatpush3.msra.mxu0 %v596_v20  ;;  %v884_v20 = vld [vmem:[#allocation14 + $0x68] sm:$0xff] }
 0x23e   :  { %1507 = vmatprep.subr.mxu0 %v1966_v0 }
 0x23f   :  { %1508 = vmatpush3.msra.mxu0 %v595_v21  ;;  %v883_v21 = vld [vmem:[#allocation14 + $0x60] sm:$0xff] }
 0x240   :  { %1509 = vmatprep.subr.mxu0 %v1966_v0 }
 0x241   :  { %1510 = vmatpush3.msra.mxu0 %v594_v22  ;;  %v882_v22 = vld [vmem:[#allocation14 + $0x58] sm:$0xff] }
 0x242   :  { %1511 = vmatprep.subr.mxu0 %v1966_v0 }
 0x243   :  { %1512 = vmatpush3.msra.mxu0 %v593_v23  ;;  %v881_v23 = vld [vmem:[#allocation14 + $0x50] sm:$0xff] }
 0x244   :  { %1513 = vmatprep.subr.mxu0 %v1966_v0 }
 0x245   :  { %1514 = vmatpush3.msra.mxu0 %v592_v24  ;;  %v880_v24 = vld [vmem:[#allocation14 + $0x48] sm:$0xff] }
 0x246   :  { %1515 = vmatprep.subr.mxu0 %v1966_v0 }
 0x247   :  { %1516 = vmatpush3.msra.mxu0 %v591_v25  ;;  %v879_v25 = vld [vmem:[#allocation14 + $0x40] sm:$0xff] }
 0x248   :  { %1517 = vmatprep.subr.mxu0 %v1966_v0 }
 0x249   :  { %1518 = vmatpush3.msra.mxu0 %v590_v26  ;;  %v878_v26 = vld [vmem:[#allocation14 + $0x38] sm:$0xff] }
 0x24a   :  { %1519 = vmatprep.subr.mxu0 %v1966_v0 }
 0x24b   :  { %1520 = vmatpush3.msra.mxu0 %v589_v33 }
 0x24c   :  { %1521 = vmatprep.subr.mxu0 %v1966_v0 }
 0x24d   :  { %1522 = vmatpush3.msra.mxu0 %v588_v34 }
 0x24e   :  { %1523 = vmatprep.subr.mxu0 %v1966_v0 }
 0x24f   :  { %1524 = vmatpush3.msra.mxu0 %v587_v35 }
 0x250   :  { %1525 = vmatprep.subr.mxu0 %v1966_v0 }
 0x251   :  { %1526 = vmatpush3.msra.mxu0 %v586_v36  ;;  %v874_v36 = vld [vmem:[#allocation14 + $0x18] sm:$0xff] }
 0x252   :  { %1565 = vmatprep.subr.mxu0 %v1966_v0 }
 0x2f2   :  { %v485_v28 = vpop.f32.mrf.mxu0 }
 0x2f3   :  { %v486_v29 = vadd.f32 %v1177_v27, %v485_v28  ;;  %v877_v27 = vld [vmem:[#allocation14 + $0x30] sm:$0xff]  ;;  %v876_v28 = vld [vmem:[#allocation14 + $0x28] sm:$0xff] }
 0x2f4   :  { %v1459_v30 = vpop.f32.mrf.mxu0 }
 0x2f5   :  { %v489_v31 = vmul.f32 0.2, %v486_v29  ;;  %v1180_v30 = vld [vmem:[%s2371_s16] ss:$0 sm:$0xff] }
 0x2f7   :  { %v490_v32 = vmax.f32 %v486_v29, %v489_v31  ;;  %v875_v29 = vld [vmem:[#allocation14 + $0x20] sm:$0xff] }
 0x2f9   :  { %1493 = vmatmul.mubr.f32.vlgmr.msra.gmra.mxu1 %v490_v32 }
 0x2fa   :  { %1562 = vmatprep.mubr.msk.f32.mxu1 %vm1967_vm0, %v1966_v0  ;;  %1531 = vmatpush3.msra.mxu1 %v696_v37  ;;  %v873_v37 = vld [vmem:[#allocation14 + $0x10] sm:$0xff] }
 0x2fb   :  { %1532 = vmatprep.subr.mxu1 %v1966_v0 }
 0x2fc   :  { %1533 = vmatpush3.msra.mxu1 %v695_v38  ;;  %v872_v38 = vld [vmem:[#allocation14 + $0x8] sm:$0xff] }
 0x2fd   :  { %1534 = vmatprep.subr.mxu1 %v1966_v0 }
 0x2fe   :  { %1535 = vmatpush3.msra.mxu1 %v694_v39  ;;  %v871_v39 = vld [vmem:[#allocation14] sm:$0xff] }
 0x2ff   :  { %1536 = vmatprep.subr.mxu1 %v1966_v0 }
 0x300   :  { %1537 = vmatpush3.msra.mxu1 %v693_v40  ;;  %v981_v40 = vld [vmem:[#allocation16 + $0x78] sm:$0xff] }
 0x301   :  { %1538 = vmatprep.subr.mxu1 %v1966_v0 }
 0x302   :  { %1539 = vmatpush3.msra.mxu1 %v692_v41  ;;  %v980_v41 = vld [vmem:[#allocation16 + $0x70] sm:$0xff] }
 0x303   :  { %1540 = vmatprep.subr.mxu1 %v1966_v0 }
 0x304   :  { %1541 = vmatpush3.msra.mxu1 %v691_v42  ;;  %v979_v42 = vld [vmem:[#allocation16 + $0x68] sm:$0xff] }
 0x305   :  { %1542 = vmatprep.subr.mxu1 %v1966_v0 }
 0x306   :  { %1543 = vmatpush3.msra.mxu1 %v690_v43  ;;  %v978_v43 = vld [vmem:[#allocation16 + $0x60] sm:$0xff] }
 0x307   :  { %1544 = vmatprep.subr.mxu1 %v1966_v0 }
 0x308   :  { %1545 = vmatpush3.msra.mxu1 %v689_v44  ;;  %v977_v44 = vld [vmem:[#allocation16 + $0x58] sm:$0xff] }
 0x309   :  { %1546 = vmatprep.subr.mxu1 %v1966_v0 }
 0x30a   :  { %1547 = vmatpush3.msra.mxu1 %v688_v45  ;;  %v976_v45 = vld [vmem:[#allocation16 + $0x50] sm:$0xff] }
 0x30b   :  { %1548 = vmatprep.subr.mxu1 %v1966_v0 }
 0x30c   :  { %1549 = vmatpush3.msra.mxu1 %v687_v46  ;;  %v975_v46 = vld [vmem:[#allocation16 + $0x48] sm:$0xff] }
 0x30d   :  { %1550 = vmatprep.subr.mxu1 %v1966_v0 }
 0x30e   :  { %1551 = vmatpush3.msra.mxu1 %v686_v47  ;;  %v974_v47 = vld [vmem:[#allocation16 + $0x40] sm:$0xff] }
 0x30f   :  { %1552 = vmatprep.subr.mxu1 %v1966_v0 }
 0x310   :  { %1553 = vmatpush3.msra.mxu1 %v685_v48  ;;  %v973_v48 = vld [vmem:[#allocation16 + $0x38] sm:$0xff] }
 0x311   :  { %1554 = vmatprep.subr.mxu1 %v1966_v0 }
 0x312   :  { %1555 = vmatpush3.msra.mxu1 %v684_v55 }
 0x313   :  { %1556 = vmatprep.subr.mxu1 %v1966_v0 }
 0x314   :  { %1557 = vmatpush3.msra.mxu1 %v683_v56 }
 0x315   :  { %1558 = vmatprep.subr.mxu1 %v1966_v0 }
 0x316   :  { %1559 = vmatpush3.msra.mxu1 %v682_v57 }
 0x317   :  { %1560 = vmatprep.subr.mxu1 %v1966_v0 }
 0x318   :  { %1561 = vmatpush3.msra.mxu1 %v681_v58  ;;  %v969_v58 = vld [vmem:[#allocation16 + $0x18] sm:$0xff] }
 0x319   :  { %1600 = vmatprep.subr.mxu1 %v1966_v0 }
 0x3b9   :  { %v580_v50 = vpop.f32.mrf.mxu1 }
 0x3ba   :  { %v581_v51 = vadd.f32 %v1178_v49, %v580_v50  ;;  %v972_v49 = vld [vmem:[#allocation16 + $0x30] sm:$0xff]  ;;  %v971_v50 = vld [vmem:[#allocation16 + $0x28] sm:$0xff] }
 0x3bb   :  { %v1494_v52 = vpop.f32.mrf.mxu1 }
 0x3bc   :  { %v584_v53 = vmul.f32 0.2, %v581_v51  ;;  %v1181_v52 = vld [vmem:[%s2372_s17] ss:$0 sm:$0xff] }
 0x3be   :  { %v585_v54 = vmax.f32 %v581_v51, %v584_v53  ;;  %v970_v51 = vld [vmem:[#allocation16 + $0x20] sm:$0xff] }
 0x3c0   :  { %1528 = vmatmul.mubr.f32.vlgmr.msra.gmra.mxu0 %v585_v54 }
 0x3c1   :  { %1597 = vmatprep.mubr.msk.f32.mxu0 %vm1967_vm0, %v1966_v0  ;;  %1566 = vmatpush3.msra.mxu0 %v791_v59  ;;  %v968_v59 = vld [vmem:[#allocation16 + $0x10] sm:$0xff] }
 0x3c2   :  { %1567 = vmatprep.subr.mxu0 %v1966_v0 }
 0x3c3   :  { %1568 = vmatpush3.msra.mxu0 %v790_v60  ;;  %v967_v60 = vld [vmem:[#allocation16 + $0x8] sm:$0xff] }
 0x3c4   :  { %1569 = vmatprep.subr.mxu0 %v1966_v0 }
 0x3c5   :  { %1570 = vmatpush3.msra.mxu0 %v789_v61  ;;  %v966_v61 = vld [vmem:[#allocation16] sm:$0xff] }
 0x3c6   :  { %1571 = vmatprep.subr.mxu0 %v1966_v0 }
 0x3c7   :  { %1572 = vmatpush3.msra.mxu0 %v788_v62  ;;  %v1076_v62 = vld [vmem:[#allocation17 + $0x78] sm:$0xff] }
 0x3c8   :  { %1573 = vmatprep.subr.mxu0 %v1966_v0 }
 0x3c9   :  { %1574 = vmatpush3.msra.mxu0 %v787_v63  ;;  %v1075_v63 = vld [vmem:[#allocation17 + $0x70] sm:$0xff] }
 0x3ca   :  { %1575 = vmatprep.subr.mxu0 %v1966_v0 }
 0x3cb   :  { %1576 = vmatpush3.msra.mxu0 %v786_v1  ;;  %v1074_v1 = vld [vmem:[#allocation17 + $0x68] sm:$0xff] }
 0x3cc   :  { %1577 = vmatprep.subr.mxu0 %v1966_v0 }
 0x3cd   :  { %1578 = vmatpush3.msra.mxu0 %v785_v2  ;;  %v1073_v2 = vld [vmem:[#allocation17 + $0x60] sm:$0xff] }
 0x3ce   :  { %1579 = vmatprep.subr.mxu0 %v1966_v0 }
 0x3cf   :  { %1580 = vmatpush3.msra.mxu0 %v784_v3  ;;  %v1072_v3 = vld [vmem:[#allocation17 + $0x58] sm:$0xff] }
 0x3d0   :  { %1581 = vmatprep.subr.mxu0 %v1966_v0 }
 0x3d1   :  { %1582 = vmatpush3.msra.mxu0 %v783_v4  ;;  %v1071_v4 = vld [vmem:[#allocation17 + $0x50] sm:$0xff] }
 0x3d2   :  { %1583 = vmatprep.subr.mxu0 %v1966_v0 }
 0x3d3   :  { %1584 = vmatpush3.msra.mxu0 %v782_v5  ;;  %v1070_v5 = vld [vmem:[#allocation17 + $0x48] sm:$0xff] }
 0x3d4   :  { %1585 = vmatprep.subr.mxu0 %v1966_v0 }
 0x3d5   :  { %1586 = vmatpush3.msra.mxu0 %v781_v6  ;;  %v1069_v6 = vld [vmem:[#allocation17 + $0x40] sm:$0xff] }
 0x3d6   :  { %1587 = vmatprep.subr.mxu0 %v1966_v0 }
 0x3d7   :  { %1588 = vmatpush3.msra.mxu0 %v780_v7  ;;  %v1068_v7 = vld [vmem:[#allocation17 + $0x38] sm:$0xff] }
 0x3d8   :  { %1589 = vmatprep.subr.mxu0 %v1966_v0 }
 0x3d9   :  { %1590 = vmatpush3.msra.mxu0 %v779_v14 }
 0x3da   :  { %1591 = vmatprep.subr.mxu0 %v1966_v0 }
 0x3db   :  { %1592 = vmatpush3.msra.mxu0 %v778_v15 }
 0x3dc   :  { %1593 = vmatprep.subr.mxu0 %v1966_v0 }
 0x3dd   :  { %1594 = vmatpush3.msra.mxu0 %v777_v16 }
 0x3de   :  { %1595 = vmatprep.subr.mxu0 %v1966_v0 }
 0x3df   :  { %1596 = vmatpush3.msra.mxu0 %v776_v17  ;;  %v1064_v17 = vld [vmem:[#allocation17 + $0x18] sm:$0xff] }
 0x3e0   :  { %1635 = vmatprep.subr.mxu0 %v1966_v0 }
 0x480   :  { %v675_v9 = vpop.f32.mrf.mxu0 }
 0x481   :  { %v676_v10 = vadd.f32 %v1179_v8, %v675_v9  ;;  %v1067_v8 = vld [vmem:[#allocation17 + $0x30] sm:$0xff]  ;;  %v1066_v9 = vld [vmem:[#allocation17 + $0x28] sm:$0xff] }
 0x482   :  { %v1529_v11 = vpop.f32.mrf.mxu0 }
 0x483   :  { %v679_v12 = vmul.f32 0.2, %v676_v10  ;;  %v1182_v11 = vld [vmem:[%s2373_s18] ss:$0 sm:$0xff] }
 0x485   :  { %v680_v13 = vmax.f32 %v676_v10, %v679_v12  ;;  %v1065_v10 = vld [vmem:[#allocation17 + $0x20] sm:$0xff] }
 0x487   :  { %1563 = vmatmul.mubr.f32.vlgmr.msra.gmra.mxu1 %v680_v13 }
 0x488   :  { %1632 = vmatprep.mubr.msk.f32.mxu1 %vm1967_vm0, %v1966_v0  ;;  %1601 = vmatpush3.msra.mxu1 %v886_v18  ;;  %v1063_v18 = vld [vmem:[#allocation17 + $0x10] sm:$0xff] }
 0x489   :  { %1602 = vmatprep.subr.mxu1 %v1966_v0 }
 0x48a   :  { %1603 = vmatpush3.msra.mxu1 %v885_v19  ;;  %v1062_v19 = vld [vmem:[#allocation17 + $0x8] sm:$0xff] }
 0x48b   :  { %1604 = vmatprep.subr.mxu1 %v1966_v0 }
 0x48c   :  { %1605 = vmatpush3.msra.mxu1 %v884_v20  ;;  %v1061_v20 = vld [vmem:[#allocation17] sm:$0xff] }
 0x48d   :  { %1606 = vmatprep.subr.mxu1 %v1966_v0 }
 0x48e   :  { %1607 = vmatpush3.msra.mxu1 %v883_v21  ;;  %v1183_v21 = vld [vmem:[%s2374_s19] ss:$0 sm:$0xff] }
 0x48f   :  { %1608 = vmatprep.subr.mxu1 %v1966_v0 }
 0x490   :  { %1609 = vmatpush3.msra.mxu1 %v882_v22 }
 0x491   :  { %1610 = vmatprep.subr.mxu1 %v1966_v0 }
 0x492   :  { %1611 = vmatpush3.msra.mxu1 %v881_v23 }
 0x493   :  { %1612 = vmatprep.subr.mxu1 %v1966_v0 }
 0x494   :  { %1613 = vmatpush3.msra.mxu1 %v880_v24 }
 0x495   :  { %1614 = vmatprep.subr.mxu1 %v1966_v0 }
 0x496   :  { %1615 = vmatpush3.msra.mxu1 %v879_v25 }
 0x497   :  { %1616 = vmatprep.subr.mxu1 %v1966_v0 }
 0x498   :  { %1617 = vmatpush3.msra.mxu1 %v878_v26 }
 0x499   :  { %1618 = vmatprep.subr.mxu1 %v1966_v0 }
 0x49a   :  { %1619 = vmatpush3.msra.mxu1 %v877_v27  ;;  %v1184_v27 = vld [vmem:[%s2375_s20] ss:$0 sm:$0xff] }
 0x49b   :  { %1620 = vmatprep.subr.mxu1 %v1966_v0 }
 0x49c   :  { %1621 = vmatpush3.msra.mxu1 %v876_v28 }
 0x49d   :  { %1622 = vmatprep.subr.mxu1 %v1966_v0 }
 0x49e   :  { %1623 = vmatpush3.msra.mxu1 %v875_v29 }
 0x49f   :  { %1624 = vmatprep.subr.mxu1 %v1966_v0 }
 0x4a0   :  { %1625 = vmatpush3.msra.mxu1 %v874_v36 }
 0x4a1   :  { %1626 = vmatprep.subr.mxu1 %v1966_v0 }
 0x4a2   :  { %1627 = vmatpush3.msra.mxu1 %v873_v37 }
 0x4a3   :  { %1628 = vmatprep.subr.mxu1 %v1966_v0 }
 0x4a4   :  { %1629 = vmatpush3.msra.mxu1 %v872_v38 }
 0x4a5   :  { %1630 = vmatprep.subr.mxu1 %v1966_v0 }
 0x4a6   :  { %1631 = vmatpush3.msra.mxu1 %v871_v39 }
 0x4a7   :  { %1670 = vmatprep.subr.mxu1 %v1966_v0 }
 0x547   :  { %v770_v31 = vpop.f32.mrf.mxu1 }
 0x548   :  { %v771_v32 = vadd.f32 %v1180_v30, %v770_v31 }
 0x549   :  { %v1564_v33 = vpop.f32.mrf.mxu1 }
 0x54a   :  { %v774_v34 = vmul.f32 0.2, %v771_v32 }
 0x54c   :  { %v775_v35 = vmax.f32 %v771_v32, %v774_v34 }
 0x54e   :  { %1598 = vmatmul.mubr.f32.vlgmr.msra.gmra.mxu0 %v775_v35 }
 0x54f   :  { %1667 = vmatprep.mubr.msk.f32.mxu0 %vm1967_vm0, %v1966_v0  ;;  %1636 = vmatpush3.msra.mxu0 %v981_v40 }
 0x550   :  { %1637 = vmatprep.subr.mxu0 %v1966_v0 }
 0x551   :  { %1638 = vmatpush3.msra.mxu0 %v980_v41 }
 0x552   :  { %1639 = vmatprep.subr.mxu0 %v1966_v0 }
 0x553   :  { %1640 = vmatpush3.msra.mxu0 %v979_v42 }
 0x554   :  { %1641 = vmatprep.subr.mxu0 %v1966_v0 }
 0x555   :  { %1642 = vmatpush3.msra.mxu0 %v978_v43 }
 0x556   :  { %1643 = vmatprep.subr.mxu0 %v1966_v0 }
 0x557   :  { %1644 = vmatpush3.msra.mxu0 %v977_v44 }
 0x558   :  { %1645 = vmatprep.subr.mxu0 %v1966_v0 }
 0x559   :  { %1646 = vmatpush3.msra.mxu0 %v976_v45 }
 0x55a   :  { %1647 = vmatprep.subr.mxu0 %v1966_v0 }
 0x55b   :  { %1648 = vmatpush3.msra.mxu0 %v975_v46 }
 0x55c   :  { %1649 = vmatprep.subr.mxu0 %v1966_v0 }
 0x55d   :  { %1650 = vmatpush3.msra.mxu0 %v974_v47 }
 0x55e   :  { %1651 = vmatprep.subr.mxu0 %v1966_v0 }
 0x55f   :  { %1652 = vmatpush3.msra.mxu0 %v973_v48 }
 0x560   :  { %1653 = vmatprep.subr.mxu0 %v1966_v0 }
 0x561   :  { %1654 = vmatpush3.msra.mxu0 %v972_v49 }
 0x562   :  { %1655 = vmatprep.subr.mxu0 %v1966_v0 }
 0x563   :  { %1656 = vmatpush3.msra.mxu0 %v971_v50 }
 0x564   :  { %1657 = vmatprep.subr.mxu0 %v1966_v0 }
 0x565   :  { %1658 = vmatpush3.msra.mxu0 %v970_v51 }
 0x566   :  { %1659 = vmatprep.subr.mxu0 %v1966_v0 }
 0x567   :  { %1660 = vmatpush3.msra.mxu0 %v969_v58 }
 0x568   :  { %1661 = vmatprep.subr.mxu0 %v1966_v0 }
 0x569   :  { %1662 = vmatpush3.msra.mxu0 %v968_v59 }
 0x56a   :  { %1663 = vmatprep.subr.mxu0 %v1966_v0 }
 0x56b   :  { %1664 = vmatpush3.msra.mxu0 %v967_v60 }
 0x56c   :  { %1665 = vmatprep.subr.mxu0 %v1966_v0 }
 0x56d   :  { %1666 = vmatpush3.msra.mxu0 %v966_v61 }
 0x60e   :  { %v865_v53 = vpop.f32.mrf.mxu0 }
 0x60f   :  { %v866_v54 = vadd.f32 %v1181_v52, %v865_v53 }
 0x610   :  { %v1599_v55 = vpop.f32.mrf.mxu0 }
 0x611   :  { %v869_v56 = vmul.f32 0.2, %v866_v54 }
 0x613   :  { %v870_v57 = vmax.f32 %v866_v54, %v869_v56 }
 0x615   :  { %1633 = vmatmul.mubr.f32.vlgmr.msra.gmra.mxu1 %v870_v57 }
 0x616   :  { %1702 = vmatprep.mubr.msk.f32.mxu1 %vm1967_vm0, %v1966_v0  ;;  %1671 = vmatpush3.msra.mxu1 %v1076_v62 }
 0x617   :  { %1672 = vmatprep.subr.mxu1 %v1966_v0 }
 0x618   :  { %1673 = vmatpush3.msra.mxu1 %v1075_v63 }
 0x619   :  { %1674 = vmatprep.subr.mxu1 %v1966_v0 }
 0x61a   :  { %1675 = vmatpush3.msra.mxu1 %v1074_v1 }
 0x61b   :  { %1676 = vmatprep.subr.mxu1 %v1966_v0 }
 0x61c   :  { %1677 = vmatpush3.msra.mxu1 %v1073_v2 }
 0x61d   :  { %1678 = vmatprep.subr.mxu1 %v1966_v0 }
 0x61e   :  { %1679 = vmatpush3.msra.mxu1 %v1072_v3 }
 0x61f   :  { %1680 = vmatprep.subr.mxu1 %v1966_v0 }
 0x620   :  { %1681 = vmatpush3.msra.mxu1 %v1071_v4 }
 0x621   :  { %1682 = vmatprep.subr.mxu1 %v1966_v0 }
 0x622   :  { %1683 = vmatpush3.msra.mxu1 %v1070_v5 }
 0x623   :  { %1684 = vmatprep.subr.mxu1 %v1966_v0 }
 0x624   :  { %1685 = vmatpush3.msra.mxu1 %v1069_v6 }
 0x625   :  { %1686 = vmatprep.subr.mxu1 %v1966_v0 }
 0x626   :  { %1687 = vmatpush3.msra.mxu1 %v1068_v7 }
 0x627   :  { %1688 = vmatprep.subr.mxu1 %v1966_v0 }
 0x628   :  { %1689 = vmatpush3.msra.mxu1 %v1067_v8 }
 0x629   :  { %1690 = vmatprep.subr.mxu1 %v1966_v0 }
 0x62a   :  { %1691 = vmatpush3.msra.mxu1 %v1066_v9 }
 0x62b   :  { %1692 = vmatprep.subr.mxu1 %v1966_v0 }
 0x62c   :  { %1693 = vmatpush3.msra.mxu1 %v1065_v10 }
 0x62d   :  { %1694 = vmatprep.subr.mxu1 %v1966_v0 }
 0x62e   :  { %1695 = vmatpush3.msra.mxu1 %v1064_v17 }
 0x62f   :  { %1696 = vmatprep.subr.mxu1 %v1966_v0 }
 0x630   :  { %1697 = vmatpush3.msra.mxu1 %v1063_v18 }
 0x631   :  { %1698 = vmatprep.subr.mxu1 %v1966_v0 }
 0x632   :  { %1699 = vmatpush3.msra.mxu1 %v1062_v19 }
 0x633   :  { %1700 = vmatprep.subr.mxu1 %v1966_v0 }
 0x634   :  { %1701 = vmatpush3.msra.mxu1 %v1061_v20 }
 0x6d5   :  { %v960_v12 = vpop.f32.mrf.mxu1 }
 0x6d6   :  { %v961_v13 = vadd.f32 %v1182_v11, %v960_v12 }
 0x6d7   :  { %v1634_v14 = vpop.f32.mrf.mxu1 }
 0x6d8   :  { %v964_v15 = vmul.f32 0.2, %v961_v13 }
 0x6da   :  { %v965_v16 = vmax.f32 %v961_v13, %v964_v15 }
 0x6dc   :  { %1668 = vmatmul.mubr.f32.vlgmr.msra.gmra.mxu0 %v965_v16 }
 0x79c   :  { %v1055_v22 = vpop.f32.mrf.mxu0 }
 0x79d   :  { %v1056_v23 = vadd.f32 %v1183_v21, %v1055_v22 }
 0x79e   :  { %v1669_v24 = vpop.f32.mrf.mxu0 }
 0x79f   :  { %v1059_v25 = vmul.f32 0.2, %v1056_v23 }
 0x7a1   :  { %v1060_v26 = vmax.f32 %v1056_v23, %v1059_v25 }
 0x7a3   :  { %1703 = vmatmul.mubr.f32.vlgmr.msra.gmra.mxu1 %v1060_v26 }
 0x863   :  { %v1150_v28 = vpop.f32.mrf.mxu1 }
 0x864   :  { %v1151_v0 = vadd.f32 %v1184_v27, %v1150_v28 }
 0x865   :  { %v1704_v29 = vpop.f32.mrf.mxu1 }
 0x866   :  { %1154 = vst [vmem:[#allocation19] sm:$0xff] %v1151_v0 }
 0x867   :  { %1931 = shalt.err (!%p1928_p12)
}
 0x868   :  { %1164 = dma.vmem_to_hbm [thread:$0]  %s1162_s5, 128, %s2376_s21, [#allocation4]  }
 0x869   :  { %1952 = dma.done.wait [#allocation4], 128  }
 0x86a   :  { %1953 = vsyncadd [#allocation4], 4294967168 }
 0x86b   :  { %1168 = vsyncpa [#allocation3], 1 }
 0x86c   :  { %1169 = vsyncpa [#allocation6], 1 }
 0x86d   :  { %1170 = vsyncpa [#allocation9], 1 }
 0x86e   :  { %1171 = vsyncpa [#allocation12], 1 }
 0x86f   :  { %1172 = vsyncpa [#allocation15], 1 }
 0x870   :  { %1173 = vsyncpa [#allocation18], 1 }
 0x871   :  { %1174 = vsyncpa [#allocation4], 1 }

</bundles_post_ra>
